<compile_context>
chip_gen: v7x
topology: tpu7x:2x2x1
jax: 0.10.0
libtpu: 0.0.40
codegen_flags: <defaults>
</compile_context>

<pallas_src>
import jax
import jax.numpy as jnp
from jax.experimental import pallas as pl
from jax.experimental.pallas import tpu as pltpu

NEG_SLOPE = 0.01      # nn.LeakyReLU default negative_slope
BN_EPS = 1e-5         # nn.BatchNorm1d default eps
LANE = 128            # TPU lane width (hidden-layer padding)
OUT_PAD = 8           # output-head lane padding (sublane-width; full-dim block is legal)
MAX_TB = 2048         # cap on batch-tile rows


def _round_up(n, m):
    return ((n + m - 1) // m) * m


# ---------------------------------------------------------------------------
# Kernel
# ---------------------------------------------------------------------------
def _mlp_kernel(x_ref,
                w1_ref, b1_ref,
                w2_ref, b2_ref,
                w3_ref, b3_ref,
                w4_ref, b4_ref,
                o_ref):
    """One batch tile of: (Linear+BN+LeakyReLU) x 3 -> Linear -> Sigmoid.

    Dropout is identity at inference; eval-mode BatchNorm1d was folded into the
    Linear weights/biases on the host.  Matmuls: bf16 MXU, f32 accumulation.
    """

    def hidden(h_bf16, w_ref, b_ref):
        z = jnp.dot(h_bf16, w_ref[...], preferred_element_type=jnp.float32) + b_ref[...]
        z = jnp.where(z >= 0, z, NEG_SLOPE * z)        # LeakyReLU (f32, VPU)
        return z.astype(jnp.bfloat16)                  # bf16 feed for next MXU matmul

    # Cast x -> bf16 on-chip (input arrives as f32; avoids a wrapper-side cast pass).
    h = hidden(x_ref[...].astype(jnp.bfloat16), w1_ref, b1_ref)
    h = hidden(h, w2_ref, b2_ref)
    h = hidden(h, w3_ref, b3_ref)

    # Output head (padded to 8 lanes): Linear + exact sigmoid.
    logits = jnp.dot(h, w4_ref[...], preferred_element_type=jnp.float32) + b4_ref[...]
    o_ref[...] = (1.0 / (1.0 + jnp.exp(-logits))).astype(o_ref.dtype)


# ---------------------------------------------------------------------------
# Parameter construction (shapes / roles match the PyTorch module)
# ---------------------------------------------------------------------------
def init_raw_params(key, in_dim, hidden=(128, 64, 32), out_classes=1):
    """Deterministic synthetic parameters matching the PyTorch module."""
    dims = (in_dim,) + tuple(hidden)
    hidden_layers = []
    for i in range(len(hidden)):
        kin, kout = dims[i], dims[i + 1]
        key, kw, kb, kg, kbe, km, kv = jax.random.split(key, 7)
        bound = 1.0 / float(kin) ** 0.5
        w = jax.random.uniform(kw, (kin, kout), jnp.float32, -bound, bound)   # [in, out]
        b = jax.random.uniform(kb, (kout,), jnp.float32, -bound, bound)
        gamma = 1.0 + 0.1 * jax.random.normal(kg, (kout,), jnp.float32)
        beta = 0.1 * jax.random.normal(kbe, (kout,), jnp.float32)
        running_mean = 0.05 * jax.random.normal(km, (kout,), jnp.float32)
        running_var = 1.0 + 0.1 * jnp.abs(jax.random.normal(kv, (kout,), jnp.float32))
        hidden_layers.append((w, b, gamma, beta, running_mean, running_var))
    kin = hidden[-1]
    key, kw, kb = jax.random.split(key, 3)
    bound = 1.0 / float(kin) ** 0.5
    w_out = jax.random.uniform(kw, (kin, out_classes), jnp.float32, -bound, bound)
    b_out = jax.random.uniform(kb, (out_classes,), jnp.float32, -bound, bound)
    return hidden_layers, (w_out, b_out)


def fold_and_pad_params(hidden_layers, out_layer):
    """Fold eval-mode BN into each Linear, zero-pad hidden widths to 128 lanes and
    the output head to 8 lanes, cast weights to bf16.
    Returns (w1, b1, w2, b2, w3, b3, w4, b4)."""
    ops = []
    prev_width = hidden_layers[0][0].shape[0]          # = input dim (layer-1 rows unpadded)
    for (w, b, gamma, beta, rmean, rvar) in hidden_layers:
        scale = gamma * jax.lax.rsqrt(rvar + BN_EPS)                   # [out]
        w_f = w * scale[None, :]                                       # BN -> Linear fold
        b_f = b * scale + (beta - rmean * scale)
        kin, kout = w_f.shape
        kout_p = _round_up(kout, LANE)
        w_p = jnp.zeros((prev_width, kout_p), jnp.float32).at[:kin, :kout].set(w_f)
        b_p = jnp.zeros((1, kout_p), jnp.float32).at[0, :kout].set(b_f)
        ops += [w_p.astype(jnp.bfloat16), b_p]
        prev_width = kout_p
    w_out, b_out = out_layer
    kin, kout = w_out.shape
    kout_p = _round_up(kout, OUT_PAD)                  # small output head: 8 lanes, not 128
    w_p = jnp.zeros((prev_width, kout_p), jnp.float32).at[:kin, :kout].set(w_out)
    b_p = jnp.zeros((1, kout_p), jnp.float32).at[0, :kout].set(b_out)
    ops += [w_p.astype(jnp.bfloat16), b_p]
    return tuple(ops)


# ---------------------------------------------------------------------------
# Wrapper
# ---------------------------------------------------------------------------
def mlp_forward(x, kernel_params, out_classes=1):
    """x: [B, D] float32. Returns [B, out_classes] float32 probabilities."""
    B, D = x.shape
    (w1, b1, w2, b2, w3, b3, w4, b4) = kernel_params
    out_pad = w4.shape[1]

    # Batch tiling: multiple-of-16 tiles (dense bf16 sublane packing); aim for a
    # 2-step grid (keeps both v7x TCs busy, negligible overhead on v5e/v6e),
    # capped at MAX_TB rows per step for larger batches.
    b16 = _round_up(max(B, 16), 16)
    if b16 >= 32:
        tb = min(MAX_TB, _round_up((b16 + 1) // 2, 16))
    else:
        tb = b16
    b_pad = _round_up(b16, tb)
    if b_pad != B:
        x = jnp.pad(x, ((0, b_pad - B), (0, 0)))
    # NOTE: x stays f32 here; the bf16 cast happens inside the kernel.

    grid = (b_pad // tb,)

    def resident(shape):                               # stays VMEM-resident across steps
        return pl.BlockSpec(shape, lambda i: (0, 0))

    in_specs = [
        pl.BlockSpec((tb, D), lambda i: (i, 0)),       # x: tiled along the batch axis
        resident(w1.shape), resident(b1.shape),
        resident(w2.shape), resident(b2.shape),
        resident(w3.shape), resident(b3.shape),
        resident(w4.shape), resident(b4.shape),
    ]

    flops = 2 * b_pad * (D * w1.shape[1]
                         + w2.shape[0] * w2.shape[1]
                         + w3.shape[0] * w3.shape[1]
                         + w4.shape[0] * w4.shape[1])
    bytes_accessed = (b_pad * D * 4                                        # f32 x read
                      + sum(int(p.size) * p.dtype.itemsize for p in kernel_params)
                      + b_pad * out_pad * 4)                               # f32 out write
    cost = pl.CostEstimate(flops=flops,
                           transcendentals=b_pad * out_pad,
                           bytes_accessed=bytes_accessed)

    out = pl.pallas_call(
        _mlp_kernel,
        out_shape=jax.ShapeDtypeStruct((b_pad, out_pad), jnp.float32),
        grid=grid,
        in_specs=in_specs,
        out_specs=pl.BlockSpec((tb, out_pad), lambda i: (i, 0)),
        compiler_params=pltpu.CompilerParams(
            dimension_semantics=("parallel",)),        # megacore-shard batch axis on v7x
        cost_estimate=cost,
    )(x, *kernel_params)

    return out[:B, :out_classes]


# ---------------------------------------------------------------------------
# Pure-JAX reference (f32) for correctness check
# ---------------------------------------------------------------------------
def mlp_reference(x, hidden_layers, out_layer):
    h = x
    for (w, b, gamma, beta, rmean, rvar) in hidden_layers:
        z = h @ w + b
        z = gamma * (z - rmean) / jnp.sqrt(rvar + BN_EPS) + beta
        h = jnp.where(z >= 0, z, NEG_SLOPE * z)
    w_out, b_out = out_layer
    logits = h @ w_out + b_out
    return jax.nn.sigmoid(logits)


# TODO(synk): output_classes > 1 would need a masked Softmax head over the padded
# lanes; only the module's default sigmoid head (output_classes == 1) is implemented.

if __name__ == "__main__":
    key = jax.random.PRNGKey(0)
    key, kx = jax.random.split(key)

    B, D = 512, 32                       # input_dimention = 32, small batch
    x = jax.random.normal(kx, (B, D), jnp.float32)

    hidden_layers, out_layer = init_raw_params(key, D, hidden=(128, 64, 32), out_classes=1)
    kernel_params = fold_and_pad_params(hidden_layers, out_layer)

    out = mlp_forward(x, kernel_params, out_classes=1)
    out = jax.block_until_ready(out)

    assert out.shape == (B, 1)
    assert bool(jnp.all(jnp.isfinite(out)))
    # exact sigmoid -> strict probabilities
    assert bool(jnp.all((out >= 0.0) & (out <= 1.0)))

    ref = mlp_reference(x, hidden_layers, out_layer)
    max_err = float(jnp.max(jnp.abs(out - ref)))
    assert max_err < 5e-2, f"mismatch vs f32 reference: {max_err}"

    print("KERNEL_OK")
</pallas_src>

<mosaic_0001>
module attributes {stable_mosaic.version = 11 : i64} {
  func.func @_mlp_kernel(%arg0: i32, %arg1: memref<256x32xf32, #tpu.memory_space<vmem>>, %arg2: memref<32x128xbf16, #tpu.memory_space<vmem>>, %arg3: memref<1x128xf32, #tpu.memory_space<vmem>>, %arg4: memref<128x128xbf16, #tpu.memory_space<vmem>>, %arg5: memref<1x128xf32, #tpu.memory_space<vmem>>, %arg6: memref<128x128xbf16, #tpu.memory_space<vmem>>, %arg7: memref<1x128xf32, #tpu.memory_space<vmem>>, %arg8: memref<128x8xbf16, #tpu.memory_space<vmem>>, %arg9: memref<1x8xf32, #tpu.memory_space<vmem>>, %arg10: memref<256x8xf32, #tpu.memory_space<vmem>>) attributes {dimension_semantics = [#tpu.dimension_semantics<parallel>], iteration_bounds = array<i64: 2>, scalar_prefetch = 0 : i64, scratch_operands = 0 : i64, tpu.core_type = #tpu.core_type<tc>, window_params = [{transform_indices = @transform_0, window_bounds = array<i64: 256, 32>}, {pipeline_mode = #tpu.pipeline_mode<synchronous>, transform_indices = @transform_1, window_bounds = array<i64: 32, 128>}, {pipeline_mode = #tpu.pipeline_mode<synchronous>, transform_indices = @transform_2, window_bounds = array<i64: 1, 128>}, {pipeline_mode = #tpu.pipeline_mode<synchronous>, transform_indices = @transform_3, window_bounds = array<i64: 128, 128>}, {pipeline_mode = #tpu.pipeline_mode<synchronous>, transform_indices = @transform_4, window_bounds = array<i64: 1, 128>}, {pipeline_mode = #tpu.pipeline_mode<synchronous>, transform_indices = @transform_5, window_bounds = array<i64: 128, 128>}, {pipeline_mode = #tpu.pipeline_mode<synchronous>, transform_indices = @transform_6, window_bounds = array<i64: 1, 128>}, {pipeline_mode = #tpu.pipeline_mode<synchronous>, transform_indices = @transform_7, window_bounds = array<i64: 128, 8>}, {pipeline_mode = #tpu.pipeline_mode<synchronous>, transform_indices = @transform_8, window_bounds = array<i64: 1, 8>}, {transform_indices = @transform_9, window_bounds = array<i64: 256, 8>}]} {
    %c0 = arith.constant 0 : index
    %c0_0 = arith.constant 0 : index
    %0 = vector.load %arg1[%c0, %c0_0] : memref<256x32xf32, #tpu.memory_space<vmem>>, vector<256x32xf32>
    %1 = arith.truncf %0 : vector<256x32xf32> to vector<256x32xbf16>
    %c0_1 = arith.constant 0 : index
    %c0_2 = arith.constant 0 : index
    %2 = vector.load %arg2[%c0_1, %c0_2] : memref<32x128xbf16, #tpu.memory_space<vmem>>, vector<32x128xbf16>
    %cst = arith.constant dense<0.000000e+00> : vector<256x128xf32>
    %3 = tpu.matmul %1, %2, %cst {dimension_numbers = #tpu.dot_dimension_numbers<[1], [0], [0], [1], [0, 0, 1, 1], [], []>} : vector<256x32xbf16>, vector<32x128xbf16>, vector<256x128xf32> -> vector<256x128xf32>
    %c0_3 = arith.constant 0 : index
    %c0_4 = arith.constant 0 : index
    %4 = vector.load %arg3[%c0_3, %c0_4] : memref<1x128xf32, #tpu.memory_space<vmem>>, vector<1x128xf32>
    %5 = vector.broadcast %4 : vector<1x128xf32> to vector<256x128xf32>
    %6 = arith.addf %3, %5 : vector<256x128xf32>
    %cst_5 = arith.constant 0.000000e+00 : f32
    %7 = vector.broadcast %cst_5 : f32 to vector<256x128xf32>
    %8 = arith.cmpf oge, %6, %7 : vector<256x128xf32>
    %cst_6 = arith.constant 0.00999999977 : f32
    %9 = vector.broadcast %cst_6 : f32 to vector<256x128xf32>
    %10 = arith.mulf %9, %6 : vector<256x128xf32>
    %11 = arith.select %8, %6, %10 : vector<256x128xi1>, vector<256x128xf32>
    %12 = arith.truncf %11 : vector<256x128xf32> to vector<256x128xbf16>
    %c0_7 = arith.constant 0 : index
    %c0_8 = arith.constant 0 : index
    %13 = vector.load %arg4[%c0_7, %c0_8] : memref<128x128xbf16, #tpu.memory_space<vmem>>, vector<128x128xbf16>
    %cst_9 = arith.constant dense<0.000000e+00> : vector<256x128xf32>
    %14 = tpu.matmul %12, %13, %cst_9 {dimension_numbers = #tpu.dot_dimension_numbers<[1], [0], [0], [1], [0, 0, 1, 1], [], []>} : vector<256x128xbf16>, vector<128x128xbf16>, vector<256x128xf32> -> vector<256x128xf32>
    %c0_10 = arith.constant 0 : index
    %c0_11 = arith.constant 0 : index
    %15 = vector.load %arg5[%c0_10, %c0_11] : memref<1x128xf32, #tpu.memory_space<vmem>>, vector<1x128xf32>
    %16 = vector.broadcast %15 : vector<1x128xf32> to vector<256x128xf32>
    %17 = arith.addf %14, %16 : vector<256x128xf32>
    %cst_12 = arith.constant 0.000000e+00 : f32
    %18 = vector.broadcast %cst_12 : f32 to vector<256x128xf32>
    %19 = arith.cmpf oge, %17, %18 : vector<256x128xf32>
    %cst_13 = arith.constant 0.00999999977 : f32
    %20 = vector.broadcast %cst_13 : f32 to vector<256x128xf32>
    %21 = arith.mulf %20, %17 : vector<256x128xf32>
    %22 = arith.select %19, %17, %21 : vector<256x128xi1>, vector<256x128xf32>
    %23 = arith.truncf %22 : vector<256x128xf32> to vector<256x128xbf16>
    %c0_14 = arith.constant 0 : index
    %c0_15 = arith.constant 0 : index
    %24 = vector.load %arg6[%c0_14, %c0_15] : memref<128x128xbf16, #tpu.memory_space<vmem>>, vector<128x128xbf16>
    %cst_16 = arith.constant dense<0.000000e+00> : vector<256x128xf32>
    %25 = tpu.matmul %23, %24, %cst_16 {dimension_numbers = #tpu.dot_dimension_numbers<[1], [0], [0], [1], [0, 0, 1, 1], [], []>} : vector<256x128xbf16>, vector<128x128xbf16>, vector<256x128xf32> -> vector<256x128xf32>
    %c0_17 = arith.constant 0 : index
    %c0_18 = arith.constant 0 : index
    %26 = vector.load %arg7[%c0_17, %c0_18] : memref<1x128xf32, #tpu.memory_space<vmem>>, vector<1x128xf32>
    %27 = vector.broadcast %26 : vector<1x128xf32> to vector<256x128xf32>
    %28 = arith.addf %25, %27 : vector<256x128xf32>
    %cst_19 = arith.constant 0.000000e+00 : f32
    %29 = vector.broadcast %cst_19 : f32 to vector<256x128xf32>
    %30 = arith.cmpf oge, %28, %29 : vector<256x128xf32>
    %cst_20 = arith.constant 0.00999999977 : f32
    %31 = vector.broadcast %cst_20 : f32 to vector<256x128xf32>
    %32 = arith.mulf %31, %28 : vector<256x128xf32>
    %33 = arith.select %30, %28, %32 : vector<256x128xi1>, vector<256x128xf32>
    %34 = arith.truncf %33 : vector<256x128xf32> to vector<256x128xbf16>
    %c0_21 = arith.constant 0 : index
    %c0_22 = arith.constant 0 : index
    %35 = vector.load %arg8[%c0_21, %c0_22] : memref<128x8xbf16, #tpu.memory_space<vmem>>, vector<128x8xbf16>
    %cst_23 = arith.constant dense<0.000000e+00> : vector<256x8xf32>
    %36 = tpu.matmul %34, %35, %cst_23 {dimension_numbers = #tpu.dot_dimension_numbers<[1], [0], [0], [1], [0, 0, 1, 1], [], []>} : vector<256x128xbf16>, vector<128x8xbf16>, vector<256x8xf32> -> vector<256x8xf32>
    %c0_24 = arith.constant 0 : index
    %c0_25 = arith.constant 0 : index
    %37 = vector.load %arg9[%c0_24, %c0_25] : memref<1x8xf32, #tpu.memory_space<vmem>>, vector<1x8xf32>
    %38 = vector.broadcast %37 : vector<1x8xf32> to vector<256x8xf32>
    %39 = arith.addf %36, %38 : vector<256x8xf32>
    %cst_26 = arith.constant 0.000000e+00 : f32
    %40 = vector.broadcast %cst_26 : f32 to vector<256x8xf32>
    %41 = arith.subf %40, %39 : vector<256x8xf32>
    %42 = math.exp %41 : vector<256x8xf32>
    %cst_27 = arith.constant 1.000000e+00 : f32
    %43 = vector.broadcast %cst_27 : f32 to vector<256x8xf32>
    %44 = arith.addf %43, %42 : vector<256x8xf32>
    %cst_28 = arith.constant 1.000000e+00 : f32
    %45 = vector.broadcast %cst_28 : f32 to vector<256x8xf32>
    %46 = arith.divf %45, %44 : vector<256x8xf32>
    %c0_29 = arith.constant 0 : index
    %c0_30 = arith.constant 0 : index
    %47 = vector.load %arg10[%c0_29, %c0_30] : memref<256x8xf32, #tpu.memory_space<vmem>>, vector<256x8xf32>
    tpu.vector_store %arg10[%c0_29, %c0_30], %46 {strides = array<i32>} : memref<256x8xf32, #tpu.memory_space<vmem>>, vector<256x8xf32>,
    return
  }
  func.func @transform_0(%arg0: i32) -> (i32, i32) {
    %c0_i32 = arith.constant 0 : i32
    %c0_i32_0 = arith.constant 0 : i32
    return %arg0, %c0_i32 : i32, i32
  }
  func.func @transform_1(%arg0: i32) -> (i32, i32) {
    %c0_i32 = arith.constant 0 : i32
    %c0_i32_0 = arith.constant 0 : i32
    %c0_i32_1 = arith.constant 0 : i32
    return %c0_i32, %c0_i32_0 : i32, i32
  }
  func.func @transform_2(%arg0: i32) -> (i32, i32) {
    %c0_i32 = arith.constant 0 : i32
    %c0_i32_0 = arith.constant 0 : i32
    %c0_i32_1 = arith.constant 0 : i32
    return %c0_i32, %c0_i32_0 : i32, i32
  }
  func.func @transform_3(%arg0: i32) -> (i32, i32) {
    %c0_i32 = arith.constant 0 : i32
    %c0_i32_0 = arith.constant 0 : i32
    %c0_i32_1 = arith.constant 0 : i32
    return %c0_i32, %c0_i32_0 : i32, i32
  }
  func.func @transform_4(%arg0: i32) -> (i32, i32) {
    %c0_i32 = arith.constant 0 : i32
    %c0_i32_0 = arith.constant 0 : i32
    %c0_i32_1 = arith.constant 0 : i32
    return %c0_i32, %c0_i32_0 : i32, i32
  }
  func.func @transform_5(%arg0: i32) -> (i32, i32) {
    %c0_i32 = arith.constant 0 : i32
    %c0_i32_0 = arith.constant 0 : i32
    %c0_i32_1 = arith.constant 0 : i32
    return %c0_i32, %c0_i32_0 : i32, i32
  }
  func.func @transform_6(%arg0: i32) -> (i32, i32) {
    %c0_i32 = arith.constant 0 : i32
    %c0_i32_0 = arith.constant 0 : i32
    %c0_i32_1 = arith.constant 0 : i32
    return %c0_i32, %c0_i32_0 : i32, i32
  }
  func.func @transform_7(%arg0: i32) -> (i32, i32) {
    %c0_i32 = arith.constant 0 : i32
    %c0_i32_0 = arith.constant 0 : i32
    %c0_i32_1 = arith.constant 0 : i32
    return %c0_i32, %c0_i32_0 : i32, i32
  }
  func.func @transform_8(%arg0: i32) -> (i32, i32) {
    %c0_i32 = arith.constant 0 : i32
    %c0_i32_0 = arith.constant 0 : i32
    %c0_i32_1 = arith.constant 0 : i32
    return %c0_i32, %c0_i32_0 : i32, i32
  }
  func.func @transform_9(%arg0: i32) -> (i32, i32) {
    %c0_i32 = arith.constant 0 : i32
    %c0_i32_0 = arith.constant 0 : i32
    return %arg0, %c0_i32 : i32, i32
  }
}

</mosaic_0001>

<bundles_post_ra>
// kernel: tpu_custom_call.1
= control target key start
LH: loop header
LB: loop body
LE: loop exit
PB: predicated region body
PF: predicated region fallthrough
CT: control target
= control target key end

     0   :  { %s2494_s30 = smov 0   ;;  %s2890_s0 = inlined_call_operand.vmem [shape: f32[512,32], index: 0, kind: input, shape index: {}]   ;;  %s2891_s1 = inlined_call_operand.vmem [shape: bf16[32,128], index: 1, kind: input, shape index: {}]   ;;  %s2892_s2 = inlined_call_operand.vmem [shape: f32[1,128], index: 2, kind: input, shape index: {}]   ;;  %s2893_s3 = inlined_call_operand.vmem [shape: bf16[128,128], index: 3, kind: input, shape index: {}]   ;;  %s2894_s4 = inlined_call_operand.vmem [shape: f32[1,128], index: 4, kind: input, shape index: {}]   ;;  %s2895_s5 = inlined_call_operand.vmem [shape: bf16[128,128], index: 5, kind: input, shape index: {}]   ;;  %s2896_s6 = inlined_call_operand.vmem [shape: f32[1,128], index: 6, kind: input, shape index: {}]   ;;  %s2897_s7 = inlined_call_operand.vmem [shape: bf16[128,8], index: 7, kind: input, shape index: {}]   ;;  %s2898_s8 = inlined_call_operand.vmem [shape: f32[1,8], index: 8, kind: input, shape index: {}]   ;;  %s2899_s9 = inlined_call_operand.vmem [shape: f32[512,8], index: 9, kind: output, shape index: {}]  }
   0x1 LB: > { %s1931_s10 = sadd.s32 4294967295, %s2442_s30   ;;  %p1935_p0 = scmp.ge.s32.totalorder %s2442_s30, 1  ;;  %s2442_s30 = sphi %s2494_s30, %s19_s30  }
   0x2   : > { %p288_p1 = scmp.lt.s32.totalorder %s2442_s30, 3 }
   0x4   : > { %p289_p2 = pnand %p1935_p0, %p288_p1 }
   0x5   : > { %v2282_v0 = vld [vmem:[%s2891_s1] sm:$0xff] (!%p289_p2)   ;;  %s1936_s13 = sshll.u32 (!%p289_p2), %s1931_s10, 5  ;;  %v2283_v1 = vld [vmem:[%s2891_s1 + $0x8] sm:$0xff] (!%p289_p2)   ;;  %v2286_v4 = vld [vmem:[%s2893_s3 + $0x10] sm:$0xff] (!%p289_p2)   ;;  %vm408_vm0 = vcmask (!%p289_p2), 261120  }
   0x6   : > { %292 = sbr.rel (%p289_p2) target bundleno = 994 (0x3e2), region = 56  ;;  %p325_p3 = scmp.lt.s32.totalorder (!%p289_p2), %s1936_s13, 63  ;;  %2078 = vmatprep.subr.bf16.mxu0 (!%p289_p2), %v2282_v0  ;;  %v2284_v2 = vld [vmem:[%s2893_s3] sm:$0xff] (!%p289_p2)   ;;  %v2285_v3 = vld [vmem:[%s2893_s3 + $0x8] sm:$0xff] (!%p289_p2)   ;;  %v2287_v14 = vld [vmem:[%s2893_s3 + $0x18] sm:$0xff] (!%p289_p2)  }
   0x7   : > { %2079 = vmatpush3.bf16.msra.mxu0 (!%p289_p2), %v2282_v0  ;;  %2114 = vmatprep.subr.bf16.mxu1 (!%p289_p2), %v2284_v2  ;;  %v2288_v19 = vld [vmem:[%s2893_s3 + $0x20] sm:$0xff] (!%p289_p2)   ;;  %v2289_v55 = vld [vmem:[%s2893_s3 + $0x28] sm:$0xff] (!%p289_p2)   ;;  %v2290_v56 = vld [vmem:[%s2893_s3 + $0x30] sm:$0xff] (!%p289_p2)  }
   0x8   : > { %2080 = vmatprep.subr.bf16.mxu0 (!%p289_p2), %v2283_v1  ;;  %2115 = vmatpush3.bf16.msra.mxu1 (!%p289_p2), %v2284_v2  ;;  %v2291_v57 = vld [vmem:[%s2893_s3 + $0x38] sm:$0xff] (!%p289_p2)   ;;  %v2292_v58 = vld [vmem:[%s2895_s5] sm:$0xff] (!%p289_p2)   ;;  %v2293_v59 = vld [vmem:[%s2895_s5 + $0x8] sm:$0xff] (!%p289_p2)  }
   0x9   : > { %2116 = vmatprep.subr.bf16.mxu1 (!%p289_p2), %v2285_v3  ;;  %v2294_v60 = vld [vmem:[%s2895_s5 + $0x10] sm:$0xff] (!%p289_p2)   ;;  %v2295_v61 = vld [vmem:[%s2895_s5 + $0x18] sm:$0xff] (!%p289_p2)   ;;  %v2296_v62 = vld [vmem:[%s2895_s5 + $0x20] sm:$0xff] (!%p289_p2)  }
   0xa   : > { %v2297_v63 = vld [vmem:[%s2895_s5 + $0x28] sm:$0xff] (!%p289_p2)   ;;  %v2298_v0 = vld [vmem:[%s2895_s5 + $0x30] sm:$0xff] (!%p289_p2)  }
   0xb   : > { %2081 = vmatpush3.bf16.msra.mxu0 (!%p289_p2), %v2283_v1  ;;  %v2614_v1 = vld [vmem:[%s2892_s2] ss:$0 sm:$0xff] (!%p289_p2) }
   0xc   : > { %2117 = vmatpush3.bf16.msra.mxu1 (!%p289_p2), %v2285_v3  ;;  %2162 = vmatprep.subr.bf16.mxu0 (!%p289_p2), %v2292_v58 }
   0xd   : > { %s2901_s13 = smov (!%p325_p3, %s1936_s13), 63  ;;  %2118 = vmatprep.subr.bf16.mxu1 %v2286_v4 }
   0xe   : > { %s1937_s20 = sshll.u32 %s2901_s13, 3 }
   0xf   : > { %s2522_s23 = scalar_lea.vmem %s2890_s0, %s1937_s20  ;;  %s2804_s24 = scalar_lea.vmem %s2899_s9, %s1937_s20 }
  0x10   : > { %v337_v5 = vld [vmem:[%s2522_s23] sm:$0xff]  ;;  %v338_v6 = vld [vmem:[%s2522_s23 + $0x8] sm:$0xff]  ;;  %v339_v7 = vld [vmem:[%s2522_s23 + $0x10] sm:$0xff]  ;;  %2119 = vmatpush3.bf16.msra.mxu1 %v2286_v4 }
  0x11   : > { %v369_v8 = vpack.c.bf16 %v338_v6, %v337_v5  ;;  %v340_v9 = vld [vmem:[%s2522_s23 + $0x18] sm:$0xff]  ;;  %v341_v10 = vld [vmem:[%s2522_s23 + $0x20] sm:$0xff]  ;;  %v342_v11 = vld [vmem:[%s2522_s23 + $0x28] sm:$0xff]  ;;  %2120 = vmatprep.subr.bf16.mxu1 %v2287_v14 }
  0x12   : > { %v370_v12 = vpack.c.bf16 %v340_v9, %v339_v7  ;;  %v371_v13 = vpack.c.bf16 %v342_v11, %v341_v10  ;;  %v343_v15 = vld [vmem:[%s2522_s23 + $0x30] sm:$0xff]  ;;  %v344_v16 = vld [vmem:[%s2522_s23 + $0x38] sm:$0xff]  ;;  %v345_v17 = vld [vmem:[%s2522_s23 + $0x40] sm:$0xff] }
  0x13   : > { %2082 = vmatprep.mubr.msk.bf16.mxu0 %vm408_vm0, %v369_v8  ;;  %v346_v18 = vld [vmem:[%s2522_s23 + $0x48] sm:$0xff]  ;;  %v372_v20 = vpack.c.bf16 %v344_v16, %v343_v15  ;;  %v347_v22 = vld [vmem:[%s2522_s23 + $0x50] sm:$0xff]  ;;  %v348_v23 = vld [vmem:[%s2522_s23 + $0x58] sm:$0xff] }
  0x14   : > { %2083 = vmatmul.mubr.msk.bf16.vlgmr.msra.gmra.mrb[0].mxu0 %vm408_vm0, %v370_v12  ;;  %v373_v21 = vpack.c.bf16 %v346_v18, %v345_v17  ;;  %2121 = vmatpush3.bf16.msra.mxu1 %v2287_v14  ;;  %v349_v24 = vld [vmem:[%s2522_s23 + $0x60] sm:$0xff]  ;;  %v350_v25 = vld [vmem:[%s2522_s23 + $0x68] sm:$0xff]  ;;  %v374_v26 = vpack.c.bf16 %v348_v23, %v347_v22  ;;  %v351_v28 = vld [vmem:[%s2522_s23 + $0x70] sm:$0xff] }
  0x15   : > { %2086 = vmatprep.mubr.msk.bf16.mxu0 %vm408_vm0, %v371_v13  ;;  %2122 = vmatprep.subr.bf16.mxu1 %v2288_v19  ;;  %v375_v27 = vpack.c.bf16 %v350_v25, %v349_v24  ;;  %v352_v29 = vld [vmem:[%s2522_s23 + $0x78] sm:$0xff]  ;;  %v353_v30 = vld [vmem:[%s2522_s23 + $0x80] sm:$0xff]  ;;  %v354_v31 = vld [vmem:[%s2522_s23 + $0x88] sm:$0xff] }
  0x16   : > { %v376_v32 = vpack.c.bf16 %v352_v29, %v351_v28  ;;  %v377_v33 = vpack.c.bf16 %v354_v31, %v353_v30  ;;  %v355_v34 = vld [vmem:[%s2522_s23 + $0x90] sm:$0xff]  ;;  %v356_v35 = vld [vmem:[%s2522_s23 + $0x98] sm:$0xff]  ;;  %v357_v36 = vld [vmem:[%s2522_s23 + $0xa0] sm:$0xff]  ;;  %2163 = vmatpush3.bf16.msra.mxu0 %v2292_v58 }
  0x17   : > { %v358_v37 = vld [vmem:[%s2522_s23 + $0xa8] sm:$0xff]  ;;  %v378_v38 = vpack.c.bf16 %v356_v35, %v355_v34  ;;  %v359_v40 = vld [vmem:[%s2522_s23 + $0xb0] sm:$0xff]  ;;  %v360_v41 = vld [vmem:[%s2522_s23 + $0xb8] sm:$0xff]  ;;  %2164 = vmatprep.subr.bf16.mxu0 %v2293_v59 }
  0x18   : > { %2123 = vmatpush3.bf16.msra.mxu1 %v2288_v19  ;;  %v379_v39 = vpack.c.bf16 %v358_v37, %v357_v36  ;;  %v361_v42 = vld [vmem:[%s2522_s23 + $0xc0] sm:$0xff]  ;;  %v362_v43 = vld [vmem:[%s2522_s23 + $0xc8] sm:$0xff]  ;;  %v380_v44 = vpack.c.bf16 %v360_v41, %v359_v40  ;;  %v363_v46 = vld [vmem:[%s2522_s23 + $0xd0] sm:$0xff] }
  0x19   : > { %v381_v45 = vpack.c.bf16 %v362_v43, %v361_v42  ;;  %v364_v47 = vld [vmem:[%s2522_s23 + $0xd8] sm:$0xff]  ;;  %v365_v48 = vld [vmem:[%s2522_s23 + $0xe0] sm:$0xff]  ;;  %v366_v49 = vld [vmem:[%s2522_s23 + $0xe8] sm:$0xff]  ;;  %2124 = vmatprep.subr.bf16.mxu1 %v2289_v55 }
  0x1a   : > { %v382_v50 = vpack.c.bf16 %v364_v47, %v363_v46  ;;  %v383_v51 = vpack.c.bf16 %v366_v49, %v365_v48  ;;  %v367_v52 = vld [vmem:[%s2522_s23 + $0xf0] sm:$0xff]  ;;  %v368_v53 = vld [vmem:[%s2522_s23 + $0xf8] sm:$0xff]  ;;  %2165 = vmatpush3.bf16.msra.mxu0 %v2293_v59 }
  0x1b   : > { %v384_v54 = vpack.c.bf16 %v368_v53, %v367_v52  ;;  %2166 = vmatprep.subr.bf16.mxu0 %v2294_v60 }
  0x1c   : > { %2087 = vmatmul.mubr.msk.bf16.gmra.mrb[4].mxu0 %vm408_vm0, %v372_v20  ;;  %2125 = vmatpush3.bf16.msra.mxu1 %v2289_v55 }
  0x1d   : > { %2090 = vmatprep.mubr.msk.bf16.mxu0 %vm408_vm0, %v373_v21  ;;  %2126 = vmatprep.subr.bf16.mxu1 %v2290_v56 }
  0x1e   : > { %2167 = vmatpush3.bf16.msra.mxu0 %v2294_v60 }
  0x1f   : > { %2168 = vmatprep.subr.bf16.mxu0 %v2295_v61 }
  0x20   : > { %2127 = vmatpush3.bf16.msra.mxu1 %v2290_v56 }
  0x21   : > { %2128 = vmatprep.subr.bf16.mxu1 %v2291_v57 }
  0x22   : > { %2169 = vmatpush3.bf16.msra.mxu0 %v2295_v61 }
  0x23   : > { %2170 = vmatprep.subr.bf16.mxu0 %v2296_v62 }
  0x24   : > { %2091 = vmatmul.mubr.msk.bf16.gmra.mrb[8].mxu0 %vm408_vm0, %v374_v26  ;;  %2129 = vmatpush3.bf16.msra.mxu1 %v2291_v57 }
  0x25   : > { %2094 = vmatprep.mubr.msk.bf16.mxu0 %vm408_vm0, %v375_v27 }
  0x26   : > { %2171 = vmatpush3.bf16.msra.mxu0 %v2296_v62 }
  0x27   : > { %2172 = vmatprep.subr.bf16.mxu0 %v2297_v63 }
  0x2a   : > { %2173 = vmatpush3.bf16.msra.mxu0 %v2297_v63 }
  0x2b   : > { %2174 = vmatprep.subr.bf16.mxu0 %v2298_v0 }
  0x2c   : > { %2095 = vmatmul.mubr.msk.bf16.gmra.mrb[12].mxu0 %vm408_vm0, %v376_v32 }
  0x2d   : > { %2098 = vmatprep.mubr.msk.bf16.mxu0 %vm408_vm0, %v377_v33 }
  0x2e   : > { %2175 = vmatpush3.bf16.msra.mxu0 %v2298_v0 }
  0x34   : > { %2099 = vmatmul.mubr.msk.bf16.gmra.mrb[16].mxu0 %vm408_vm0, %v378_v38 }
  0x35   : > { %2102 = vmatprep.mubr.msk.bf16.mxu0 %vm408_vm0, %v379_v39 }
  0x3c   : > { %2103 = vmatmul.mubr.msk.bf16.gmra.mrb[20].mxu0 %vm408_vm0, %v380_v44 }
  0x3d   : > { %2106 = vmatprep.mubr.msk.bf16.mxu0 %vm408_vm0, %v381_v45 }
  0x44   : > { %2107 = vmatmul.mubr.msk.bf16.gmra.mrb[24].mxu0 %vm408_vm0, %v382_v50 }
  0x45   : > { %2110 = vmatprep.mubr.msk.bf16.mxu0 %vm408_vm0, %v383_v51 }
  0x4c   : > { %2111 = vmatmul.mubr.msk.bf16.gmra.mrb[28].mxu0 %vm408_vm0, %v384_v54 }
  0xe7   : > { %v2084_v2 = vpop.f32.mrb[0].mxu0 }
  0xe8   : > { %v500_v3 = vadd.f32 %v2084_v2, %v2614_v1  ;;  %v491_v4 = vpop.f32.mrb[1].mxu0 }
  0xe9   : > { %v492_v5 = vadd.f32 %v2614_v1, %v491_v4  ;;  %v2085_v6 = vpop.f32.mrb[2].mxu0 }
  0xea   : > { %v652_v7 = vmul.f32 0.01, %v500_v3  ;;  %v503_v8 = vadd.f32 %v2085_v6, %v2614_v1  ;;  %v494_v9 = vpop.f32.mrb[3].mxu0  ;;  %vm620_vm1 = vcmp.ge.f32.partialorder %v500_v3, 0.0 }
  0xeb   : > { %v650_v10 = vmul.f32 0.01, %v492_v5  ;;  %v495_v11 = vadd.f32 %v2614_v1, %v494_v9  ;;  %vm618_vm3 = vcmp.ge.f32.partialorder %v492_v5, 0.0 }
  0xec   : > { %vm621_vm2 = vcmp.ge.f32.partialorder %v503_v8, 0.0  ;;  %v653_v12 = vmul.f32 0.01, %v503_v8  ;;  %v684_v14 = vsel %vm620_vm1, %v500_v3, %v652_v7 }
  0xed   : > { %v651_v13 = vmul.f32 0.01, %v495_v11  ;;  %vm619_vm4 = vcmp.ge.f32.partialorder %v495_v11, 0.0  ;;  %v682_v17 = vsel %vm618_vm3, %v492_v5, %v650_v10 }
  0xee   : > { %v685_v15 = vsel %vm621_vm2, %v503_v8, %v653_v12 }
  0xef   : > { %v2088_v16 = vpop.f32.mrb[4].mxu0  ;;  %v683_v18 = vsel %vm619_vm4, %v495_v11, %v651_v13  ;;  %v715_v19 = vpack.c.bf16 %v685_v15, %v684_v14 }
  0xf0   : > { %v516_v20 = vadd.f32 %v2088_v16, %v2614_v1  ;;  %v507_v21 = vpop.f32.mrb[5].mxu0  ;;  %v714_v22 = vpack.c.bf16 %v683_v18, %v682_v17 }
  0xf1   : > { %v508_v23 = vadd.f32 %v2614_v1, %v507_v21  ;;  %v2089_v24 = vpop.f32.mrb[6].mxu0 }
  0xf2   : > { %v656_v25 = vmul.f32 0.01, %v516_v20  ;;  %v519_v26 = vadd.f32 %v2089_v24, %v2614_v1  ;;  %v510_v27 = vpop.f32.mrb[7].mxu0  ;;  %2130 = vmatprep.mubr.bf16.mxu1 %v714_v22  ;;  %vm624_vm5 = vcmp.ge.f32.partialorder %v516_v20, 0.0 }
  0xf3   : > { %v654_v28 = vmul.f32 0.01, %v508_v23  ;;  %v511_v29 = vadd.f32 %v2614_v1, %v510_v27  ;;  %2131 = vmatmul.mubr.bf16.vlgmr.msra.gmra.mrb[0].mxu1 %v715_v19  ;;  %vm622_vm6 = vcmp.ge.f32.partialorder %v508_v23, 0.0 }
  0xf4   : > { %vm625_vm7 = vcmp.ge.f32.partialorder %v519_v26, 0.0  ;;  %v657_v30 = vmul.f32 0.01, %v519_v26  ;;  %v688_v32 = vsel %vm624_vm5, %v516_v20, %v656_v25 }
  0xf5   : > { %vm623_vm8 = vcmp.ge.f32.partialorder %v511_v29, 0.0  ;;  %v655_v31 = vmul.f32 0.01, %v511_v29  ;;  %v686_v35 = vsel %vm622_vm6, %v508_v23, %v654_v28 }
  0xf6   : > { %v689_v33 = vsel %vm625_vm7, %v519_v26, %v657_v30 }
  0xf7   : > { %v2092_v34 = vpop.f32.mrb[8].mxu0  ;;  %v687_v36 = vsel %vm623_vm8, %v511_v29, %v655_v31  ;;  %v717_v37 = vpack.c.bf16 %v689_v33, %v688_v32 }
  0xf8   : > { %v532_v38 = vadd.f32 %v2092_v34, %v2614_v1  ;;  %v523_v39 = vpop.f32.mrb[9].mxu0  ;;  %v716_v40 = vpack.c.bf16 %v687_v36, %v686_v35 }
  0xf9   : > { %v524_v41 = vadd.f32 %v2614_v1, %v523_v39  ;;  %v2093_v42 = vpop.f32.mrb[10].mxu0 }
  0xfa   : > { %v660_v43 = vmul.f32 0.01, %v532_v38  ;;  %v535_v44 = vadd.f32 %v2093_v42, %v2614_v1  ;;  %v526_v45 = vpop.f32.mrb[11].mxu0  ;;  %2134 = vmatprep.mubr.bf16.mxu1 %v716_v40  ;;  %vm628_vm9 = vcmp.ge.f32.partialorder %v532_v38, 0.0 }
  0xfb   : > { %v658_v46 = vmul.f32 0.01, %v524_v41  ;;  %v527_v47 = vadd.f32 %v2614_v1, %v526_v45  ;;  %2135 = vmatmul.mubr.bf16.gmra.mrb[4].mxu1 %v717_v37  ;;  %vm626_vm10 = vcmp.ge.f32.partialorder %v524_v41, 0.0 }
  0xfc   : > { %vm629_vm11 = vcmp.ge.f32.partialorder %v535_v44, 0.0  ;;  %v661_v48 = vmul.f32 0.01, %v535_v44  ;;  %v692_v50 = vsel %vm628_vm9, %v532_v38, %v660_v43 }
  0xfd   : > { %vm627_vm12 = vcmp.ge.f32.partialorder %v527_v47, 0.0  ;;  %v659_v49 = vmul.f32 0.01, %v527_v47  ;;  %v690_v53 = vsel %vm626_vm10, %v524_v41, %v658_v46 }
  0xfe   : > { %v693_v51 = vsel %vm629_vm11, %v535_v44, %v661_v48 }
  0xff   : > { %v2096_v52 = vpop.f32.mrb[12].mxu0  ;;  %v691_v54 = vsel %vm627_vm12, %v527_v47, %v659_v49  ;;  %v719_v55 = vpack.c.bf16 %v693_v51, %v692_v50 }
 0x100   : > { %v548_v56 = vadd.f32 %v2096_v52, %v2614_v1  ;;  %v539_v57 = vpop.f32.mrb[13].mxu0  ;;  %v718_v58 = vpack.c.bf16 %v691_v54, %v690_v53 }
 0x101   : > { %v540_v59 = vadd.f32 %v2614_v1, %v539_v57  ;;  %v2097_v60 = vpop.f32.mrb[14].mxu0 }
 0x102   : > { %v664_v61 = vmul.f32 0.01, %v548_v56  ;;  %v551_v62 = vadd.f32 %v2097_v60, %v2614_v1  ;;  %v542_v63 = vpop.f32.mrb[15].mxu0  ;;  %2138 = vmatprep.mubr.bf16.mxu1 %v718_v58  ;;  %vm632_vm13 = vcmp.ge.f32.partialorder %v548_v56, 0.0 }
 0x103   : > { %v662_v0 = vmul.f32 0.01, %v540_v59  ;;  %v543_v2 = vadd.f32 %v2614_v1, %v542_v63  ;;  %2139 = vmatmul.mubr.bf16.gmra.mrb[8].mxu1 %v719_v55  ;;  %vm630_vm14 = vcmp.ge.f32.partialorder %v540_v59, 0.0 }
 0x104   : > { %vm633_vm15 = vcmp.ge.f32.partialorder %v551_v62, 0.0  ;;  %v665_v3 = vmul.f32 0.01, %v551_v62  ;;  %v696_v5 = vsel %vm632_vm13, %v548_v56, %v664_v61 }
 0x105   : > { %vm631_vm0 = vcmp.ge.f32.partialorder %v543_v2, 0.0  ;;  %v663_v4 = vmul.f32 0.01, %v543_v2  ;;  %v694_v8 = vsel %vm630_vm14, %v540_v59, %v662_v0 }
 0x106   : > { %v697_v6 = vsel %vm633_vm15, %v551_v62, %v665_v3 }
 0x107   : > { %v2100_v7 = vpop.f32.mrb[16].mxu0  ;;  %v695_v9 = vsel %vm631_vm0, %v543_v2, %v663_v4  ;;  %v721_v10 = vpack.c.bf16 %v697_v6, %v696_v5 }
 0x108   : > { %v564_v11 = vadd.f32 %v2100_v7, %v2614_v1  ;;  %v555_v12 = vpop.f32.mrb[17].mxu0  ;;  %v720_v13 = vpack.c.bf16 %v695_v9, %v694_v8 }
 0x109   : > { %v556_v14 = vadd.f32 %v2614_v1, %v555_v12  ;;  %v2101_v15 = vpop.f32.mrb[18].mxu0 }
 0x10a   : > { %v668_v16 = vmul.f32 0.01, %v564_v11  ;;  %v567_v17 = vadd.f32 %v2101_v15, %v2614_v1  ;;  %v558_v18 = vpop.f32.mrb[19].mxu0  ;;  %2142 = vmatprep.mubr.bf16.mxu1 %v720_v13  ;;  %vm636_vm1 = vcmp.ge.f32.partialorder %v564_v11, 0.0 }
 0x10b   : > { %v666_v19 = vmul.f32 0.01, %v556_v14  ;;  %v559_v20 = vadd.f32 %v2614_v1, %v558_v18  ;;  %2143 = vmatmul.mubr.bf16.gmra.mrb[12].mxu1 %v721_v10  ;;  %vm634_vm2 = vcmp.ge.f32.partialorder %v556_v14, 0.0 }
 0x10c   : > { %vm637_vm3 = vcmp.ge.f32.partialorder %v567_v17, 0.0  ;;  %v669_v21 = vmul.f32 0.01, %v567_v17  ;;  %v700_v23 = vsel %vm636_vm1, %v564_v11, %v668_v16 }
 0x10d   : > { %vm635_vm4 = vcmp.ge.f32.partialorder %v559_v20, 0.0  ;;  %v667_v22 = vmul.f32 0.01, %v559_v20  ;;  %v698_v26 = vsel %vm634_vm2, %v556_v14, %v666_v19 }
 0x10e   : > { %v701_v24 = vsel %vm637_vm3, %v567_v17, %v669_v21  ;;  %v2657_v21 = vld [vmem:[%s2897_s7 + $0x8] sm:$0xff]  }
 0x10f   : > { %v2104_v25 = vpop.f32.mrb[20].mxu0  ;;  %v699_v27 = vsel %vm635_vm4, %v559_v20, %v667_v22  ;;  %v723_v28 = vpack.c.bf16 %v701_v24, %v700_v23  ;;  %v2299_v20 = vld [vmem:[%s2895_s5 + $0x38] sm:$0xff]   ;;  %v2663_v22 = vld [vmem:[%s2897_s7 + $0x10] sm:$0xff]   ;;  %v2677_v24 = vld [vmem:[%s2897_s7 + $0x20] sm:$0xff]  }
 0x110   : > { %v580_v29 = vadd.f32 %v2104_v25, %v2614_v1  ;;  %v571_v30 = vpop.f32.mrb[21].mxu0  ;;  %v722_v31 = vpack.c.bf16 %v699_v27, %v698_v26  ;;  %2176 = vmatprep.subr.bf16.mxu0 %v2299_v20  ;;  %v2670_v23 = vld [vmem:[%s2897_s7 + $0x18] sm:$0xff]   ;;  %v2684_v25 = vld [vmem:[%s2897_s7 + $0x28] sm:$0xff]   ;;  %v2692_v26 = vld [vmem:[%s2894_s4] ss:$0 sm:$0xff] }
 0x111   : > { %v572_v32 = vadd.f32 %v2614_v1, %v571_v30  ;;  %v2105_v33 = vpop.f32.mrb[22].mxu0  ;;  %2177 = vmatpush3.bf16.msra.mxu0 %v2299_v20 }
 0x112   : > { %v672_v34 = vmul.f32 0.01, %v580_v29  ;;  %v583_v35 = vadd.f32 %v2105_v33, %v2614_v1  ;;  %v574_v36 = vpop.f32.mrb[23].mxu0  ;;  %2146 = vmatprep.mubr.bf16.mxu1 %v722_v31  ;;  %vm640_vm5 = vcmp.ge.f32.partialorder %v580_v29, 0.0 }
 0x113   : > { %v670_v37 = vmul.f32 0.01, %v572_v32  ;;  %v575_v38 = vadd.f32 %v2614_v1, %v574_v36  ;;  %2147 = vmatmul.mubr.bf16.gmra.mrb[16].mxu1 %v723_v28  ;;  %vm638_vm6 = vcmp.ge.f32.partialorder %v572_v32, 0.0 }
 0x114   : > { %vm641_vm7 = vcmp.ge.f32.partialorder %v583_v35, 0.0  ;;  %v673_v39 = vmul.f32 0.01, %v583_v35  ;;  %v704_v41 = vsel %vm640_vm5, %v580_v29, %v672_v34 }
 0x115   : > { %vm639_vm8 = vcmp.ge.f32.partialorder %v575_v38, 0.0  ;;  %v671_v40 = vmul.f32 0.01, %v575_v38  ;;  %v702_v44 = vsel %vm638_vm6, %v572_v32, %v670_v37 }
 0x116   : > { %v705_v42 = vsel %vm641_vm7, %v583_v35, %v673_v39 }
 0x117   : > { %v2108_v43 = vpop.f32.mrb[24].mxu0  ;;  %v703_v45 = vsel %vm639_vm8, %v575_v38, %v671_v40  ;;  %v725_v46 = vpack.c.bf16 %v705_v42, %v704_v41 }
 0x118   : > { %v596_v47 = vadd.f32 %v2108_v43, %v2614_v1  ;;  %v587_v48 = vpop.f32.mrb[25].mxu0  ;;  %v724_v49 = vpack.c.bf16 %v703_v45, %v702_v44 }
 0x119   : > { %v588_v50 = vadd.f32 %v2614_v1, %v587_v48  ;;  %v2109_v51 = vpop.f32.mrb[26].mxu0 }
 0x11a   : > { %v676_v52 = vmul.f32 0.01, %v596_v47  ;;  %v599_v53 = vadd.f32 %v2109_v51, %v2614_v1  ;;  %v590_v54 = vpop.f32.mrb[27].mxu0  ;;  %2150 = vmatprep.mubr.bf16.mxu1 %v724_v49  ;;  %vm644_vm9 = vcmp.ge.f32.partialorder %v596_v47, 0.0 }
 0x11b   : > { %v674_v55 = vmul.f32 0.01, %v588_v50  ;;  %v591_v56 = vadd.f32 %v2614_v1, %v590_v54  ;;  %2151 = vmatmul.mubr.bf16.gmra.mrb[20].mxu1 %v725_v46  ;;  %vm642_vm10 = vcmp.ge.f32.partialorder %v588_v50, 0.0 }
 0x11c   : > { %vm645_vm11 = vcmp.ge.f32.partialorder %v599_v53, 0.0  ;;  %v677_v57 = vmul.f32 0.01, %v599_v53  ;;  %v708_v59 = vsel %vm644_vm9, %v596_v47, %v676_v52 }
 0x11d   : > { %vm643_vm12 = vcmp.ge.f32.partialorder %v591_v56, 0.0  ;;  %v675_v58 = vmul.f32 0.01, %v591_v56  ;;  %v706_v62 = vsel %vm642_vm10, %v588_v50, %v674_v55 }
 0x11e   : > { %v709_v60 = vsel %vm645_vm11, %v599_v53, %v677_v57 }
 0x11f   : > { %v2112_v61 = vpop.f32.mrb[28].mxu0  ;;  %v707_v63 = vsel %vm643_vm12, %v591_v56, %v675_v58  ;;  %v727_v0 = vpack.c.bf16 %v709_v60, %v708_v59 }
 0x120   : > { %v612_v2 = vadd.f32 %v2112_v61, %v2614_v1  ;;  %v603_v3 = vpop.f32.mrb[29].mxu0  ;;  %v726_v4 = vpack.c.bf16 %v707_v63, %v706_v62 }
 0x121   : > { %v604_v5 = vadd.f32 %v2614_v1, %v603_v3  ;;  %v2113_v6 = vpop.f32.mrb[30].mxu0 }
 0x122   : > { %v680_v7 = vmul.f32 0.01, %v612_v2  ;;  %v615_v8 = vadd.f32 %v2113_v6, %v2614_v1  ;;  %v606_v9 = vpop.f32.mrb[31].mxu0  ;;  %2154 = vmatprep.mubr.bf16.mxu1 %v726_v4  ;;  %vm648_vm13 = vcmp.ge.f32.partialorder %v612_v2, 0.0 }
 0x123   : > { %v678_v10 = vmul.f32 0.01, %v604_v5  ;;  %v607_v11 = vadd.f32 %v2614_v1, %v606_v9  ;;  %2155 = vmatmul.mubr.bf16.gmra.mrb[24].mxu1 %v727_v0  ;;  %vm646_vm14 = vcmp.ge.f32.partialorder %v604_v5, 0.0  ;;  %v2300_v1 = vld [vmem:[%s2897_s7] sm:$0xff]  }
 0x124   : > { %vm649_vm15 = vcmp.ge.f32.partialorder %v615_v8, 0.0  ;;  %v681_v12 = vmul.f32 0.01, %v615_v8  ;;  %v712_v14 = vsel %vm648_vm13, %v612_v2, %v680_v7  ;;  %2258 = vmatprep.subr.bf16.mxu1 %v2300_v1  ;;  %2210 = vmatprep.subr.bf16.mxu0 %v2300_v1 }
 0x125   : > { %vm647_vm0 = vcmp.ge.f32.partialorder %v607_v11, 0.0  ;;  %v679_v13 = vmul.f32 0.01, %v607_v11  ;;  %v710_v16 = vsel %vm646_vm14, %v604_v5, %v678_v10  ;;  %2266 = vmatpush3.bf16.msra.mxu1 %v2300_v1 }
 0x126   : > { %v713_v15 = vsel %vm649_vm15, %v615_v8, %v681_v12  ;;  %2259 = vmatprep.subr.bf16.mxu1 %v2657_v21 }
 0x127   : > { %v711_v17 = vsel %vm647_vm0, %v607_v11, %v679_v13  ;;  %v729_v18 = vpack.c.bf16 %v713_v15, %v712_v14 }
 0x128   : > { %v728_v19 = vpack.c.bf16 %v711_v17, %v710_v16 }
 0x129   : > { %2267 = vmatpush3.bf16.msra.mxu1 %v2657_v21 }
 0x12a   : > { %2158 = vmatprep.mubr.bf16.mxu1 %v728_v19  ;;  %2260 = vmatprep.subr.bf16.mxu1 %v2663_v22 }
 0x12b   : > { %2159 = vmatmul.mubr.bf16.gmra.mrb[28].mxu1 %v729_v18 }
 0x12d   : > { %2268 = vmatpush3.bf16.msra.mxu1 %v2663_v22 }
 0x12e   : > { %2261 = vmatprep.subr.bf16.mxu1 %v2670_v23 }
 0x131   : > { %2269 = vmatpush3.bf16.msra.mxu1 %v2670_v23 }
 0x132   : > { %2262 = vmatprep.subr.bf16.mxu1 %v2677_v24 }
 0x135   : > { %2270 = vmatpush3.bf16.msra.mxu1 %v2677_v24 }
 0x136   : > { %2263 = vmatprep.subr.bf16.mxu1 %v2684_v25 }
 0x139   : > { %2271 = vmatpush3.bf16.msra.mxu1 %v2684_v25 }
 0x1c6   : > { %v2132_v27 = vpop.f32.mrb[0].mxu1 }
 0x1c7   : > { %v844_v28 = vadd.f32 %v2132_v27, %v2692_v26  ;;  %v835_v29 = vpop.f32.mrb[1].mxu1 }
 0x1c8   : > { %v836_v30 = vadd.f32 %v2692_v26, %v835_v29  ;;  %v2133_v31 = vpop.f32.mrb[2].mxu1 }
 0x1c9   : > { %v996_v32 = vmul.f32 0.01, %v844_v28  ;;  %v847_v33 = vadd.f32 %v2133_v31, %v2692_v26  ;;  %v838_v34 = vpop.f32.mrb[3].mxu1  ;;  %vm964_vm1 = vcmp.ge.f32.partialorder %v844_v28, 0.0 }
 0x1ca   : > { %v994_v35 = vmul.f32 0.01, %v836_v30  ;;  %v839_v36 = vadd.f32 %v2692_v26, %v838_v34  ;;  %vm962_vm2 = vcmp.ge.f32.partialorder %v836_v30, 0.0 }
 0x1cb   : > { %vm965_vm3 = vcmp.ge.f32.partialorder %v847_v33, 0.0  ;;  %v997_v37 = vmul.f32 0.01, %v847_v33  ;;  %v1028_v39 = vsel %vm964_vm1, %v844_v28, %v996_v32 }
 0x1cc   : > { %vm963_vm4 = vcmp.ge.f32.partialorder %v839_v36, 0.0  ;;  %v995_v38 = vmul.f32 0.01, %v839_v36  ;;  %v1026_v43 = vsel %vm962_vm2, %v836_v30, %v994_v35 }
 0x1cd   : > { %v1029_v40 = vsel %vm965_vm3, %v847_v33, %v997_v37 }
 0x1ce   : > { %v1059_v41 = vpack.c.bf16 %v1029_v40, %v1028_v39  ;;  %v2136_v42 = vpop.f32.mrb[4].mxu1  ;;  %v1027_v44 = vsel %vm963_vm4, %v839_v36, %v995_v38 }
 0x1cf   : > { %v860_v45 = vadd.f32 %v2136_v42, %v2692_v26  ;;  %v851_v46 = vpop.f32.mrb[5].mxu1  ;;  %v1058_v47 = vpack.c.bf16 %v1027_v44, %v1026_v43 }
 0x1d0   : > { %v852_v48 = vadd.f32 %v2692_v26, %v851_v46  ;;  %v2137_v49 = vpop.f32.mrb[6].mxu1 }
 0x1d1   : > { %v1000_v50 = vmul.f32 0.01, %v860_v45  ;;  %v863_v51 = vadd.f32 %v2137_v49, %v2692_v26  ;;  %v854_v52 = vpop.f32.mrb[7].mxu1  ;;  %2178 = vmatprep.mubr.bf16.mxu0 %v1058_v47  ;;  %vm968_vm5 = vcmp.ge.f32.partialorder %v860_v45, 0.0 }
 0x1d2   : > { %v998_v53 = vmul.f32 0.01, %v852_v48  ;;  %v855_v54 = vadd.f32 %v2692_v26, %v854_v52  ;;  %2179 = vmatmul.mubr.bf16.vlgmr.msra.gmra.mrb[32].mxu0 %v1059_v41  ;;  %vm966_vm6 = vcmp.ge.f32.partialorder %v852_v48, 0.0 }
 0x1d3   : > { %vm969_vm7 = vcmp.ge.f32.partialorder %v863_v51, 0.0  ;;  %v1001_v55 = vmul.f32 0.01, %v863_v51  ;;  %2211 = vmatpush3.bf16.msra.mxu0 %v2300_v1  ;;  %v1032_v57 = vsel %vm968_vm5, %v860_v45, %v1000_v50 }
 0x1d4   : > { %vm967_vm8 = vcmp.ge.f32.partialorder %v855_v54, 0.0  ;;  %v999_v56 = vmul.f32 0.01, %v855_v54  ;;  %2212 = vmatprep.subr.bf16.mxu0 %v2657_v21  ;;  %v1030_v60 = vsel %vm966_vm6, %v852_v48, %v998_v53 }
 0x1d5   : > { %v1033_v58 = vsel %vm969_vm7, %v863_v51, %v1001_v55 }
 0x1d6   : > { %v2140_v59 = vpop.f32.mrb[8].mxu1  ;;  %v1031_v61 = vsel %vm967_vm8, %v855_v54, %v999_v56  ;;  %v1061_v62 = vpack.c.bf16 %v1033_v58, %v1032_v57 }
 0x1d7   : > { %v876_v63 = vadd.f32 %v2140_v59, %v2692_v26  ;;  %v867_v0 = vpop.f32.mrb[9].mxu1  ;;  %v1060_v2 = vpack.c.bf16 %v1031_v61, %v1030_v60  ;;  %2213 = vmatpush3.bf16.msra.mxu0 %v2657_v21 }
 0x1d8   : > { %v868_v3 = vadd.f32 %v2692_v26, %v867_v0  ;;  %v2141_v4 = vpop.f32.mrb[10].mxu1  ;;  %2214 = vmatprep.subr.bf16.mxu0 %v2663_v22 }
 0x1d9   : > { %v1004_v5 = vmul.f32 0.01, %v876_v63  ;;  %v879_v6 = vadd.f32 %v2141_v4, %v2692_v26  ;;  %v870_v7 = vpop.f32.mrb[11].mxu1  ;;  %2182 = vmatprep.mubr.bf16.mxu0 %v1060_v2  ;;  %vm972_vm9 = vcmp.ge.f32.partialorder %v876_v63, 0.0 }
 0x1da   : > { %v1002_v8 = vmul.f32 0.01, %v868_v3  ;;  %v871_v9 = vadd.f32 %v2692_v26, %v870_v7  ;;  %2183 = vmatmul.mubr.bf16.gmra.mrb[36].mxu0 %v1061_v62  ;;  %vm970_vm10 = vcmp.ge.f32.partialorder %v868_v3, 0.0 }
 0x1db   : > { %vm973_vm11 = vcmp.ge.f32.partialorder %v879_v6, 0.0  ;;  %v1005_v10 = vmul.f32 0.01, %v879_v6  ;;  %2215 = vmatpush3.bf16.msra.mxu0 %v2663_v22  ;;  %v1036_v12 = vsel %vm972_vm9, %v876_v63, %v1004_v5 }
 0x1dc   : > { %vm971_vm12 = vcmp.ge.f32.partialorder %v871_v9, 0.0  ;;  %v1003_v11 = vmul.f32 0.01, %v871_v9  ;;  %2216 = vmatprep.subr.bf16.mxu0 %v2670_v23  ;;  %v1034_v15 = vsel %vm970_vm10, %v868_v3, %v1002_v8 }
 0x1dd   : > { %v1037_v13 = vsel %vm973_vm11, %v879_v6, %v1005_v10 }
 0x1de   : > { %v2144_v14 = vpop.f32.mrb[12].mxu1  ;;  %v1035_v16 = vsel %vm971_vm12, %v871_v9, %v1003_v11  ;;  %v1063_v17 = vpack.c.bf16 %v1037_v13, %v1036_v12 }
 0x1df   : > { %v892_v18 = vadd.f32 %v2144_v14, %v2692_v26  ;;  %v883_v19 = vpop.f32.mrb[13].mxu1  ;;  %v1062_v20 = vpack.c.bf16 %v1035_v16, %v1034_v15  ;;  %2217 = vmatpush3.bf16.msra.mxu0 %v2670_v23 }
 0x1e0   : > { %v884_v1 = vadd.f32 %v2692_v26, %v883_v19  ;;  %v2145_v21 = vpop.f32.mrb[14].mxu1  ;;  %2218 = vmatprep.subr.bf16.mxu0 %v2677_v24 }
 0x1e1   : > { %v1008_v22 = vmul.f32 0.01, %v892_v18  ;;  %v895_v27 = vadd.f32 %v2145_v21, %v2692_v26  ;;  %v886_v28 = vpop.f32.mrb[15].mxu1  ;;  %2186 = vmatprep.mubr.bf16.mxu0 %v1062_v20  ;;  %vm976_vm13 = vcmp.ge.f32.partialorder %v892_v18, 0.0 }
 0x1e2   : > { %v1006_v29 = vmul.f32 0.01, %v884_v1  ;;  %v887_v30 = vadd.f32 %v2692_v26, %v886_v28  ;;  %2187 = vmatmul.mubr.bf16.gmra.mrb[40].mxu0 %v1063_v17  ;;  %vm974_vm14 = vcmp.ge.f32.partialorder %v884_v1, 0.0 }
 0x1e3   : > { %vm977_vm15 = vcmp.ge.f32.partialorder %v895_v27, 0.0  ;;  %v1009_v31 = vmul.f32 0.01, %v895_v27  ;;  %2219 = vmatpush3.bf16.msra.mxu0 %v2677_v24  ;;  %v1040_v32 = vsel %vm976_vm13, %v892_v18, %v1008_v22 }
 0x1e4   : > { %vm975_vm0 = vcmp.ge.f32.partialorder %v887_v30, 0.0  ;;  %v1007_v23 = vmul.f32 0.01, %v887_v30  ;;  %2220 = vmatprep.subr.bf16.mxu0 %v2684_v25  ;;  %v1038_v35 = vsel %vm974_vm14, %v884_v1, %v1006_v29 }
 0x1e5   : > { %v1041_v33 = vsel %vm977_vm15, %v895_v27, %v1009_v31 }
 0x1e6   : > { %v2148_v34 = vpop.f32.mrb[16].mxu1  ;;  %v1039_v36 = vsel %vm975_vm0, %v887_v30, %v1007_v23  ;;  %v1065_v37 = vpack.c.bf16 %v1041_v33, %v1040_v32 }
 0x1e7   : > { %v908_v38 = vadd.f32 %v2148_v34, %v2692_v26  ;;  %v899_v39 = vpop.f32.mrb[17].mxu1  ;;  %v1064_v40 = vpack.c.bf16 %v1039_v36, %v1038_v35  ;;  %2221 = vmatpush3.bf16.msra.mxu0 %v2684_v25 }
 0x1e8   : > { %v900_v41 = vadd.f32 %v2692_v26, %v899_v39  ;;  %v2149_v42 = vpop.f32.mrb[18].mxu1 }
 0x1e9   : > { %v1012_v24 = vmul.f32 0.01, %v908_v38  ;;  %v911_v43 = vadd.f32 %v2149_v42, %v2692_v26  ;;  %v902_v44 = vpop.f32.mrb[19].mxu1  ;;  %2190 = vmatprep.mubr.bf16.mxu0 %v1064_v40  ;;  %vm980_vm1 = vcmp.ge.f32.partialorder %v908_v38, 0.0 }
 0x1ea   : > { %v1010_v45 = vmul.f32 0.01, %v900_v41  ;;  %v903_v46 = vadd.f32 %v2692_v26, %v902_v44  ;;  %2191 = vmatmul.mubr.bf16.gmra.mrb[44].mxu0 %v1065_v37  ;;  %vm978_vm2 = vcmp.ge.f32.partialorder %v900_v41, 0.0 }
 0x1eb   : > { %vm981_vm3 = vcmp.ge.f32.partialorder %v911_v43, 0.0  ;;  %v1013_v47 = vmul.f32 0.01, %v911_v43  ;;  %v1044_v49 = vsel %vm980_vm1, %v908_v38, %v1012_v24 }
 0x1ec   : > { %vm979_vm4 = vcmp.ge.f32.partialorder %v903_v46, 0.0  ;;  %v1011_v48 = vmul.f32 0.01, %v903_v46  ;;  %v1042_v51 = vsel %vm978_vm2, %v900_v41, %v1010_v45 }
 0x1ed   : > { %v1045_v25 = vsel %vm981_vm3, %v911_v43, %v1013_v47  ;;  %v2745_v47 = vld [vmem:[%s2896_s6] ss:$0 sm:$0xff] }
 0x1ee   : > { %v2152_v50 = vpop.f32.mrb[20].mxu1  ;;  %v1043_v52 = vsel %vm979_vm4, %v903_v46, %v1011_v48  ;;  %v1067_v53 = vpack.c.bf16 %v1045_v25, %v1044_v49  ;;  %v2306_v46 = vld [vmem:[%s2897_s7 + $0x30] sm:$0xff]  }
 0x1ef   : > { %v924_v54 = vadd.f32 %v2152_v50, %v2692_v26  ;;  %v915_v55 = vpop.f32.mrb[21].mxu1  ;;  %v1066_v56 = vpack.c.bf16 %v1043_v52, %v1042_v51  ;;  %2264 = vmatprep.subr.bf16.mxu1 %v2306_v46  ;;  %2222 = vmatprep.subr.bf16.mxu0 %v2306_v46 }
 0x1f0   : > { %v916_v57 = vadd.f32 %v2692_v26, %v915_v55  ;;  %v2153_v58 = vpop.f32.mrb[22].mxu1  ;;  %2272 = vmatpush3.bf16.msra.mxu1 %v2306_v46  ;;  %2223 = vmatpush3.bf16.msra.mxu0 %v2306_v46 }
 0x1f1   : > { %v1016_v59 = vmul.f32 0.01, %v924_v54  ;;  %v927_v60 = vadd.f32 %v2153_v58, %v2692_v26  ;;  %v918_v61 = vpop.f32.mrb[23].mxu1  ;;  %2194 = vmatprep.mubr.bf16.mxu0 %v1066_v56  ;;  %vm984_vm5 = vcmp.ge.f32.partialorder %v924_v54, 0.0 }
 0x1f2   : > { %v1014_v62 = vmul.f32 0.01, %v916_v57  ;;  %v919_v63 = vadd.f32 %v2692_v26, %v918_v61  ;;  %2195 = vmatmul.mubr.bf16.gmra.mrb[48].mxu0 %v1067_v53  ;;  %vm982_vm6 = vcmp.ge.f32.partialorder %v916_v57, 0.0 }
 0x1f3   : > { %vm985_vm7 = vcmp.ge.f32.partialorder %v927_v60, 0.0  ;;  %v1017_v0 = vmul.f32 0.01, %v927_v60  ;;  %v1048_v3 = vsel %vm984_vm5, %v924_v54, %v1016_v59 }
 0x1f4   : > { %vm983_vm8 = vcmp.ge.f32.partialorder %v919_v63, 0.0  ;;  %v1015_v2 = vmul.f32 0.01, %v919_v63  ;;  %v1046_v6 = vsel %vm982_vm6, %v916_v57, %v1014_v62 }
 0x1f5   : > { %v1049_v4 = vsel %vm985_vm7, %v927_v60, %v1017_v0 }
 0x1f6   : > { %v2156_v5 = vpop.f32.mrb[24].mxu1  ;;  %v1047_v7 = vsel %vm983_vm8, %v919_v63, %v1015_v2  ;;  %v1069_v8 = vpack.c.bf16 %v1049_v4, %v1048_v3 }
 0x1f7   : > { %v940_v9 = vadd.f32 %v2156_v5, %v2692_v26  ;;  %v931_v10 = vpop.f32.mrb[25].mxu1  ;;  %v1068_v11 = vpack.c.bf16 %v1047_v7, %v1046_v6 }
 0x1f8   : > { %v932_v12 = vadd.f32 %v2692_v26, %v931_v10  ;;  %v2157_v13 = vpop.f32.mrb[26].mxu1 }
 0x1f9   : > { %v1020_v14 = vmul.f32 0.01, %v940_v9  ;;  %v943_v15 = vadd.f32 %v2157_v13, %v2692_v26  ;;  %v934_v16 = vpop.f32.mrb[27].mxu1  ;;  %2198 = vmatprep.mubr.bf16.mxu0 %v1068_v11  ;;  %vm988_vm9 = vcmp.ge.f32.partialorder %v940_v9, 0.0 }
 0x1fa   : > { %v1018_v17 = vmul.f32 0.01, %v932_v12  ;;  %v935_v18 = vadd.f32 %v2692_v26, %v934_v16  ;;  %2199 = vmatmul.mubr.bf16.gmra.mrb[52].mxu0 %v1069_v8  ;;  %vm986_vm10 = vcmp.ge.f32.partialorder %v932_v12, 0.0 }
 0x1fb   : > { %vm989_vm11 = vcmp.ge.f32.partialorder %v943_v15, 0.0  ;;  %v1021_v19 = vmul.f32 0.01, %v943_v15  ;;  %v1052_v1 = vsel %vm988_vm9, %v940_v9, %v1020_v14 }
 0x1fc   : > { %vm987_vm12 = vcmp.ge.f32.partialorder %v935_v18, 0.0  ;;  %v1019_v20 = vmul.f32 0.01, %v935_v18  ;;  %v1050_v27 = vsel %vm986_vm10, %v932_v12, %v1018_v17 }
 0x1fd   : > { %v1053_v21 = vsel %vm989_vm11, %v943_v15, %v1021_v19 }
 0x1fe   : > { %v2160_v22 = vpop.f32.mrb[28].mxu1  ;;  %v1051_v28 = vsel %vm987_vm12, %v935_v18, %v1019_v20  ;;  %v1071_v29 = vpack.c.bf16 %v1053_v21, %v1052_v1 }
 0x1ff   : > { %v956_v30 = vadd.f32 %v2160_v22, %v2692_v26  ;;  %v947_v31 = vpop.f32.mrb[29].mxu1  ;;  %v1070_v23 = vpack.c.bf16 %v1051_v28, %v1050_v27 }
 0x200   : > { %v948_v32 = vadd.f32 %v2692_v26, %v947_v31  ;;  %v2161_v33 = vpop.f32.mrb[30].mxu1 }
 0x201   : > { %v1024_v34 = vmul.f32 0.01, %v956_v30  ;;  %v959_v35 = vadd.f32 %v2161_v33, %v2692_v26  ;;  %v950_v36 = vpop.f32.mrb[31].mxu1  ;;  %2202 = vmatprep.mubr.bf16.mxu0 %v1070_v23  ;;  %vm992_vm13 = vcmp.ge.f32.partialorder %v956_v30, 0.0 }
 0x202   : > { %v1022_v37 = vmul.f32 0.01, %v948_v32  ;;  %v951_v38 = vadd.f32 %v2692_v26, %v950_v36  ;;  %2203 = vmatmul.mubr.bf16.gmra.mrb[56].mxu0 %v1071_v29  ;;  %vm990_vm14 = vcmp.ge.f32.partialorder %v948_v32, 0.0  ;;  %v2307_v26 = vld [vmem:[%s2897_s7 + $0x38] sm:$0xff]  }
 0x203   : > { %vm993_vm15 = vcmp.ge.f32.partialorder %v959_v35, 0.0  ;;  %v1025_v39 = vmul.f32 0.01, %v959_v35  ;;  %v1056_v41 = vsel %vm992_vm13, %v956_v30, %v1024_v34  ;;  %2224 = vmatprep.subr.bf16.mxu0 %v2307_v26  ;;  %2265 = vmatprep.subr.bf16.mxu1 %v2307_v26 }
 0x204   : > { %vm991_vm0 = vcmp.ge.f32.partialorder %v951_v38, 0.0  ;;  %v1023_v40 = vmul.f32 0.01, %v951_v38  ;;  %v1054_v24 = vsel %vm990_vm14, %v948_v32, %v1022_v37  ;;  %2225 = vmatpush3.bf16.msra.mxu0 %v2307_v26  ;;  %2273 = vmatpush3.bf16.msra.mxu1 %v2307_v26 }
 0x205   : > { %v1057_v42 = vsel %vm993_vm15, %v959_v35, %v1025_v39 }
 0x206   : > { %v1055_v43 = vsel %vm991_vm0, %v951_v38, %v1023_v40  ;;  %v1073_v44 = vpack.c.bf16 %v1057_v42, %v1056_v41 }
 0x207   : > { %v1072_v45 = vpack.c.bf16 %v1055_v43, %v1054_v24 }
 0x209   : > { %2206 = vmatprep.mubr.bf16.mxu0 %v1072_v45 }
 0x20a   : > { %2207 = vmatmul.mubr.bf16.gmra.mrb[60].mxu0 %v1073_v44 }
 0x2a5   : > { %v2180_v48 = vpop.f32.mrb[32].mxu0 }
 0x2a6   : > { %v1188_v49 = vadd.f32 %v2180_v48, %v2745_v47  ;;  %v1179_v25 = vpop.f32.mrb[33].mxu0 }
 0x2a7   : > { %v1180_v50 = vadd.f32 %v2745_v47, %v1179_v25  ;;  %v2181_v51 = vpop.f32.mrb[34].mxu0 }
 0x2a8   : > { %v1340_v52 = vmul.f32 0.01, %v1188_v49  ;;  %v1191_v53 = vadd.f32 %v2181_v51, %v2745_v47  ;;  %v1182_v54 = vpop.f32.mrb[35].mxu0  ;;  %vm1308_vm1 = vcmp.ge.f32.partialorder %v1188_v49, 0.0 }
 0x2a9   : > { %v1338_v55 = vmul.f32 0.01, %v1180_v50  ;;  %v1183_v56 = vadd.f32 %v2745_v47, %v1182_v54  ;;  %vm1306_vm2 = vcmp.ge.f32.partialorder %v1180_v50, 0.0 }
 0x2aa   : > { %vm1309_vm3 = vcmp.ge.f32.partialorder %v1191_v53, 0.0  ;;  %v1341_v57 = vmul.f32 0.01, %v1191_v53  ;;  %v1372_v59 = vsel %vm1308_vm1, %v1188_v49, %v1340_v52 }
 0x2ab   : > { %vm1307_vm4 = vcmp.ge.f32.partialorder %v1183_v56, 0.0  ;;  %v1339_v58 = vmul.f32 0.01, %v1183_v56  ;;  %v1370_v63 = vsel %vm1306_vm2, %v1180_v50, %v1338_v55 }
 0x2ac   : > { %v1373_v60 = vsel %vm1309_vm3, %v1191_v53, %v1341_v57 }
 0x2ad   : > { %v1403_v61 = vpack.c.bf16 %v1373_v60, %v1372_v59  ;;  %v2184_v62 = vpop.f32.mrb[36].mxu0  ;;  %v1371_v0 = vsel %vm1307_vm4, %v1183_v56, %v1339_v58 }
 0x2ae   : > { %v1204_v2 = vadd.f32 %v2184_v62, %v2745_v47  ;;  %v1195_v3 = vpop.f32.mrb[37].mxu0  ;;  %v1402_v4 = vpack.c.bf16 %v1371_v0, %v1370_v63 }
 0x2af   : > { %v1196_v5 = vadd.f32 %v2745_v47, %v1195_v3  ;;  %v2185_v6 = vpop.f32.mrb[38].mxu0 }
 0x2b0   : > { %v1344_v7 = vmul.f32 0.01, %v1204_v2  ;;  %v1207_v8 = vadd.f32 %v2185_v6, %v2745_v47  ;;  %v1198_v9 = vpop.f32.mrb[39].mxu0  ;;  %2226 = vmatprep.mubr.bf16.mxu0 %v1402_v4  ;;  %vm1312_vm5 = vcmp.ge.f32.partialorder %v1204_v2, 0.0 }
 0x2b1   : > { %v1342_v10 = vmul.f32 0.01, %v1196_v5  ;;  %v1199_v11 = vadd.f32 %v2745_v47, %v1198_v9  ;;  %2227 = vmatmul.mubr.bf16.vlgmr.msra.gmra.mrb[64].mxu0 %v1403_v61  ;;  %vm1310_vm6 = vcmp.ge.f32.partialorder %v1196_v5, 0.0 }
 0x2b2   : > { %vm1313_vm7 = vcmp.ge.f32.partialorder %v1207_v8, 0.0  ;;  %v1345_v12 = vmul.f32 0.01, %v1207_v8  ;;  %v1376_v14 = vsel %vm1312_vm5, %v1204_v2, %v1344_v7 }
 0x2b3   : > { %vm1311_vm8 = vcmp.ge.f32.partialorder %v1199_v11, 0.0  ;;  %v1343_v13 = vmul.f32 0.01, %v1199_v11  ;;  %v1374_v18 = vsel %vm1310_vm6, %v1196_v5, %v1342_v10 }
 0x2b4   : > { %v1377_v15 = vsel %vm1313_vm7, %v1207_v8, %v1345_v12 }
 0x2b5   : > { %v1405_v16 = vpack.c.bf16 %v1377_v15, %v1376_v14  ;;  %v2188_v17 = vpop.f32.mrb[40].mxu0  ;;  %v1375_v19 = vsel %vm1311_vm8, %v1199_v11, %v1343_v13 }
 0x2b6   : > { %v1220_v20 = vadd.f32 %v2188_v17, %v2745_v47  ;;  %v1211_v1 = vpop.f32.mrb[41].mxu0  ;;  %v1404_v21 = vpack.c.bf16 %v1375_v19, %v1374_v18 }
 0x2b7   : > { %v1212_v22 = vadd.f32 %v2745_v47, %v1211_v1  ;;  %v2189_v27 = vpop.f32.mrb[42].mxu0 }
 0x2b8   : > { %v1348_v28 = vmul.f32 0.01, %v1220_v20  ;;  %v1223_v29 = vadd.f32 %v2189_v27, %v2745_v47  ;;  %v1214_v30 = vpop.f32.mrb[43].mxu0  ;;  %2230 = vmatprep.mubr.bf16.mxu1 %v1404_v21  ;;  %vm1316_vm9 = vcmp.ge.f32.partialorder %v1220_v20, 0.0 }
 0x2b9   : > { %v1346_v31 = vmul.f32 0.01, %v1212_v22  ;;  %v1215_v23 = vadd.f32 %v2745_v47, %v1214_v30  ;;  %2231 = vmatmul.mubr.bf16.vlgmr.msra.gmra.mrb[32].mxu1 %v1405_v16  ;;  %vm1314_vm10 = vcmp.ge.f32.partialorder %v1212_v22, 0.0 }
 0x2ba   : > { %vm1317_vm11 = vcmp.ge.f32.partialorder %v1223_v29, 0.0  ;;  %v1349_v32 = vmul.f32 0.01, %v1223_v29  ;;  %v1380_v34 = vsel %vm1316_vm9, %v1220_v20, %v1348_v28 }
 0x2bb   : > { %vm1315_vm12 = vcmp.ge.f32.partialorder %v1215_v23, 0.0  ;;  %v1347_v33 = vmul.f32 0.01, %v1215_v23  ;;  %v1378_v37 = vsel %vm1314_vm10, %v1212_v22, %v1346_v31 }
 0x2bc   : > { %v1381_v35 = vsel %vm1317_vm11, %v1223_v29, %v1349_v32 }
 0x2bd   : > { %v2192_v36 = vpop.f32.mrb[44].mxu0  ;;  %v1379_v38 = vsel %vm1315_vm12, %v1215_v23, %v1347_v33  ;;  %v1407_v39 = vpack.c.bf16 %v1381_v35, %v1380_v34 }
 0x2be   : > { %v1236_v40 = vadd.f32 %v2192_v36, %v2745_v47  ;;  %v1227_v41 = vpop.f32.mrb[45].mxu0  ;;  %v1406_v42 = vpack.c.bf16 %v1379_v38, %v1378_v37 }
 0x2bf   : > { %v1228_v24 = vadd.f32 %v2745_v47, %v1227_v41  ;;  %v2193_v43 = vpop.f32.mrb[46].mxu0 }
 0x2c0   : > { %v1352_v44 = vmul.f32 0.01, %v1236_v40  ;;  %v1239_v45 = vadd.f32 %v2193_v43, %v2745_v47  ;;  %v1230_v46 = vpop.f32.mrb[47].mxu0  ;;  %2234 = vmatprep.mubr.bf16.mxu1 %v1406_v42  ;;  %vm1320_vm13 = vcmp.ge.f32.partialorder %v1236_v40, 0.0 }
 0x2c1   : > { %v1350_v26 = vmul.f32 0.01, %v1228_v24  ;;  %v1231_v48 = vadd.f32 %v2745_v47, %v1230_v46  ;;  %2235 = vmatmul.mubr.bf16.gmra.mrb[36].mxu1 %v1407_v39  ;;  %vm1318_vm14 = vcmp.ge.f32.partialorder %v1228_v24, 0.0 }
 0x2c2   : > { %vm1321_vm15 = vcmp.ge.f32.partialorder %v1239_v45, 0.0  ;;  %v1353_v49 = vmul.f32 0.01, %v1239_v45  ;;  %v1384_v50 = vsel %vm1320_vm13, %v1236_v40, %v1352_v44 }
 0x2c3   : > { %vm1319_vm0 = vcmp.ge.f32.partialorder %v1231_v48, 0.0  ;;  %v1351_v25 = vmul.f32 0.01, %v1231_v48  ;;  %v1382_v53 = vsel %vm1318_vm14, %v1228_v24, %v1350_v26 }
 0x2c4   : > { %v1385_v51 = vsel %vm1321_vm15, %v1239_v45, %v1353_v49 }
 0x2c5   : > { %v2196_v52 = vpop.f32.mrb[48].mxu0  ;;  %v1383_v54 = vsel %vm1319_vm0, %v1231_v48, %v1351_v25  ;;  %v1409_v55 = vpack.c.bf16 %v1385_v51, %v1384_v50 }
 0x2c6   : > { %v1252_v56 = vadd.f32 %v2196_v52, %v2745_v47  ;;  %v1243_v57 = vpop.f32.mrb[49].mxu0  ;;  %v1408_v58 = vpack.c.bf16 %v1383_v54, %v1382_v53 }
 0x2c7   : > { %v1244_v59 = vadd.f32 %v2745_v47, %v1243_v57  ;;  %v2197_v60 = vpop.f32.mrb[50].mxu0 }
 0x2c8   : > { %v1356_v61 = vmul.f32 0.01, %v1252_v56  ;;  %v1255_v62 = vadd.f32 %v2197_v60, %v2745_v47  ;;  %v1246_v63 = vpop.f32.mrb[51].mxu0  ;;  %2238 = vmatprep.mubr.bf16.mxu1 %v1408_v58  ;;  %vm1324_vm1 = vcmp.ge.f32.partialorder %v1252_v56, 0.0 }
 0x2c9   : > { %v1354_v0 = vmul.f32 0.01, %v1244_v59  ;;  %v1247_v2 = vadd.f32 %v2745_v47, %v1246_v63  ;;  %2239 = vmatmul.mubr.bf16.gmra.mrb[40].mxu1 %v1409_v55  ;;  %vm1322_vm2 = vcmp.ge.f32.partialorder %v1244_v59, 0.0 }
 0x2ca   : > { %vm1325_vm3 = vcmp.ge.f32.partialorder %v1255_v62, 0.0  ;;  %v1357_v3 = vmul.f32 0.01, %v1255_v62  ;;  %v1388_v5 = vsel %vm1324_vm1, %v1252_v56, %v1356_v61  ;;  %vm1842_vm1 = vcmask 64512  }
 0x2cb   : > { %vm1323_vm4 = vcmp.ge.f32.partialorder %v1247_v2, 0.0  ;;  %v1355_v4 = vmul.f32 0.01, %v1247_v2  ;;  %v1386_v8 = vsel %vm1322_vm2, %v1244_v59, %v1354_v0 }
 0x2cc   : > { %v1389_v6 = vsel %vm1325_vm3, %v1255_v62, %v1357_v3 }
 0x2cd   : > { %v2200_v7 = vpop.f32.mrb[52].mxu0  ;;  %v1387_v9 = vsel %vm1323_vm4, %v1247_v2, %v1355_v4  ;;  %v1411_v10 = vpack.c.bf16 %v1389_v6, %v1388_v5  ;;  %v2782_v2 = vld [vmem:[%s2898_s8] ss:$0 sm:$0xff] }
 0x2ce   : > { %v1268_v11 = vadd.f32 %v2200_v7, %v2745_v47  ;;  %v1259_v12 = vpop.f32.mrb[53].mxu0  ;;  %v1410_v13 = vpack.c.bf16 %v1387_v9, %v1386_v8 }
 0x2cf   : > { %v1260_v14 = vadd.f32 %v2745_v47, %v1259_v12  ;;  %v2201_v15 = vpop.f32.mrb[54].mxu0 }
 0x2d0   : > { %v1360_v16 = vmul.f32 0.01, %v1268_v11  ;;  %v1271_v17 = vadd.f32 %v2201_v15, %v2745_v47  ;;  %v1262_v18 = vpop.f32.mrb[55].mxu0  ;;  %2242 = vmatprep.mubr.bf16.mxu1 %v1410_v13  ;;  %vm1328_vm5 = vcmp.ge.f32.partialorder %v1268_v11, 0.0 }
 0x2d1   : > { %v1358_v19 = vmul.f32 0.01, %v1260_v14  ;;  %v1263_v20 = vadd.f32 %v2745_v47, %v1262_v18  ;;  %2243 = vmatmul.mubr.bf16.gmra.mrb[44].mxu1 %v1411_v10  ;;  %vm1326_vm6 = vcmp.ge.f32.partialorder %v1260_v14, 0.0 }
 0x2d2   : > { %vm1329_vm7 = vcmp.ge.f32.partialorder %v1271_v17, 0.0  ;;  %v1361_v1 = vmul.f32 0.01, %v1271_v17  ;;  %v1392_v22 = vsel %vm1328_vm5, %v1268_v11, %v1360_v16 }
 0x2d3   : > { %vm1327_vm8 = vcmp.ge.f32.partialorder %v1263_v20, 0.0  ;;  %v1359_v21 = vmul.f32 0.01, %v1263_v20  ;;  %v1390_v29 = vsel %vm1326_vm6, %v1260_v14, %v1358_v19 }
 0x2d4   : > { %v1393_v27 = vsel %vm1329_vm7, %v1271_v17, %v1361_v1 }
 0x2d5   : > { %v2204_v28 = vpop.f32.mrb[56].mxu0  ;;  %v1391_v30 = vsel %vm1327_vm8, %v1263_v20, %v1359_v21  ;;  %v1413_v31 = vpack.c.bf16 %v1393_v27, %v1392_v22 }
 0x2d6   : > { %v1284_v23 = vadd.f32 %v2204_v28, %v2745_v47  ;;  %v1275_v32 = vpop.f32.mrb[57].mxu0  ;;  %v1412_v33 = vpack.c.bf16 %v1391_v30, %v1390_v29 }
 0x2d7   : > { %v1276_v34 = vadd.f32 %v2745_v47, %v1275_v32  ;;  %v2205_v35 = vpop.f32.mrb[58].mxu0 }
 0x2d8   : > { %v1364_v36 = vmul.f32 0.01, %v1284_v23  ;;  %v1287_v37 = vadd.f32 %v2205_v35, %v2745_v47  ;;  %v1278_v38 = vpop.f32.mrb[59].mxu0  ;;  %2246 = vmatprep.mubr.bf16.mxu1 %v1412_v33  ;;  %vm1332_vm9 = vcmp.ge.f32.partialorder %v1284_v23, 0.0 }
 0x2d9   : > { %v1362_v39 = vmul.f32 0.01, %v1276_v34  ;;  %v1279_v40 = vadd.f32 %v2745_v47, %v1278_v38  ;;  %2247 = vmatmul.mubr.bf16.gmra.mrb[48].mxu1 %v1413_v31  ;;  %vm1330_vm10 = vcmp.ge.f32.partialorder %v1276_v34, 0.0 }
 0x2da   : > { %vm1333_vm11 = vcmp.ge.f32.partialorder %v1287_v37, 0.0  ;;  %v1365_v41 = vmul.f32 0.01, %v1287_v37  ;;  %v1396_v24 = vsel %vm1332_vm9, %v1284_v23, %v1364_v36 }
 0x2db   : > { %vm1331_vm12 = vcmp.ge.f32.partialorder %v1279_v40, 0.0  ;;  %v1363_v42 = vmul.f32 0.01, %v1279_v40  ;;  %v1394_v45 = vsel %vm1330_vm10, %v1276_v34, %v1362_v39 }
 0x2dc   : > { %v1397_v43 = vsel %vm1333_vm11, %v1287_v37, %v1365_v41 }
 0x2dd   : > { %v2208_v44 = vpop.f32.mrb[60].mxu0  ;;  %v1395_v46 = vsel %vm1331_vm12, %v1279_v40, %v1363_v42  ;;  %v1415_v26 = vpack.c.bf16 %v1397_v43, %v1396_v24 }
 0x2de   : > { %v1300_v48 = vadd.f32 %v2208_v44, %v2745_v47  ;;  %v1291_v49 = vpop.f32.mrb[61].mxu0  ;;  %v1414_v25 = vpack.c.bf16 %v1395_v46, %v1394_v45 }
 0x2df   : > { %v1292_v50 = vadd.f32 %v2745_v47, %v1291_v49  ;;  %v2209_v51 = vpop.f32.mrb[62].mxu0 }
 0x2e0   : > { %v1368_v52 = vmul.f32 0.01, %v1300_v48  ;;  %v1303_v53 = vadd.f32 %v2209_v51, %v2745_v47  ;;  %v1294_v54 = vpop.f32.mrb[63].mxu0  ;;  %2250 = vmatprep.mubr.bf16.mxu1 %v1414_v25  ;;  %vm1336_vm13 = vcmp.ge.f32.partialorder %v1300_v48, 0.0 }
 0x2e1   : > { %v1366_v55 = vmul.f32 0.01, %v1292_v50  ;;  %v1295_v56 = vadd.f32 %v2745_v47, %v1294_v54  ;;  %2251 = vmatmul.mubr.bf16.gmra.mrb[52].mxu1 %v1415_v26  ;;  %vm1334_vm14 = vcmp.ge.f32.partialorder %v1292_v50, 0.0 }
 0x2e2   : > { %vm1337_vm15 = vcmp.ge.f32.partialorder %v1303_v53, 0.0  ;;  %v1369_v57 = vmul.f32 0.01, %v1303_v53  ;;  %v1400_v59 = vsel %vm1336_vm13, %v1300_v48, %v1368_v52 }
 0x2e3   : > { %vm1335_vm0 = vcmp.ge.f32.partialorder %v1295_v56, 0.0  ;;  %v1367_v58 = vmul.f32 0.01, %v1295_v56  ;;  %v1398_v61 = vsel %vm1334_vm14, %v1292_v50, %v1366_v55 }
 0x2e4   : > { %v1401_v60 = vsel %vm1337_vm15, %v1303_v53, %v1369_v57 }
 0x2e5   : > { %v1399_v62 = vsel %vm1335_vm0, %v1295_v56, %v1367_v58  ;;  %v1417_v63 = vpack.c.bf16 %v1401_v60, %v1400_v59 }
 0x2e6   : > { %v1416_v0 = vpack.c.bf16 %v1399_v62, %v1398_v61 }
 0x2e8   : > { %2254 = vmatprep.mubr.bf16.mxu1 %v1416_v0 }
 0x2e9   : > { %2255 = vmatmul.mubr.bf16.gmra.mrb[56].mxu1 %v1417_v63 }
 0x384   : > { %v2228_v47 = vpop.f32.mrb[64].mxu0 }
 0x385   : > { %v1532_v3 = vadd.f32 %v2228_v47, %v2782_v2  ;;  %v1523_v4 = vpop.f32.mrb[65].mxu0 }
 0x386   : > { %v1524_v5 = vadd.f32 %v2782_v2, %v1523_v4  ;;  %v2229_v6 = vpop.f32.mrb[66].mxu0 }
 0x387   : > { %v1652_v7 = vsub.f32 0.0, %v1532_v3  ;;  %v1535_v8 = vadd.f32 %v2229_v6, %v2782_v2  ;;  %v1526_v9 = vpop.f32.mrb[67].mxu0 }
 0x388   : > { %v1650_v10 = vsub.f32 0.0, %v1524_v5  ;;  %v1527_v11 = vadd.f32 %v2782_v2, %v1526_v9 }
 0x389   : > { %v1686_v12 = vmul.f32 1.442695, %v1652_v7  ;;  %v1653_v13 = vsub.f32 0.0, %v1535_v8 }
 0x38a   : > { %v1682_v14 = vmul.f32 1.442695, %v1650_v10  ;;  %v1651_v15 = vsub.f32 0.0, %v1527_v11 }
 0x38b   : > { %2308 = vpow2.f32 %v1686_v12  ;;  %v1688_v16 = vmul.f32 1.442695, %v1653_v13 }
 0x38c   : > { %2310 = vpow2.f32 %v1682_v14  ;;  %v1684_v17 = vmul.f32 1.442695, %v1651_v15  ;;  %v2232_v18 = vpop.f32.mrb[32].mxu1 }
 0x38d   : > { %2312 = vpow2.f32 %v1688_v16  ;;  %v1548_v19 = vadd.f32 %v2232_v18, %v2782_v2  ;;  %v1539_v20 = vpop.f32.mrb[33].mxu1 }
 0x38e   : > { %2314 = vpow2.f32 %v1684_v17  ;;  %v1540_v1 = vadd.f32 %v2782_v2, %v1539_v20  ;;  %v2233_v21 = vpop.f32.mrb[34].mxu1 }
 0x38f   : > { %v1656_v22 = vsub.f32 0.0, %v1548_v19  ;;  %v1551_v27 = vadd.f32 %v2233_v21, %v2782_v2  ;;  %v1542_v28 = vpop.f32.mrb[35].mxu1 }
 0x390   : > { %v1654_v29 = vsub.f32 0.0, %v1540_v1  ;;  %v1543_v30 = vadd.f32 %v2782_v2, %v1542_v28 }
 0x391   : > { %v1694_v31 = vmul.f32 1.442695, %v1656_v22  ;;  %v1657_v23 = vsub.f32 0.0, %v1551_v27 }
 0x392   : > { %v1690_v32 = vmul.f32 1.442695, %v1654_v29  ;;  %v1655_v33 = vsub.f32 0.0, %v1543_v30 }
 0x393   : > { %2316 = vpow2.f32 %v1694_v31  ;;  %v1696_v34 = vmul.f32 1.442695, %v1657_v23 }
 0x394   : > { %2318 = vpow2.f32 %v1690_v32  ;;  %v1692_v35 = vmul.f32 1.442695, %v1655_v33  ;;  %v2236_v36 = vpop.f32.mrb[36].mxu1 }
 0x395   : > { %v2309_v37 = vpop.eup %2308  ;;  %2320 = vpow2.f32 %v1696_v34  ;;  %v1564_v38 = vadd.f32 %v2236_v36, %v2782_v2  ;;  %v1555_v39 = vpop.f32.mrb[37].mxu1 }
 0x396   : > { %v2311_v40 = vpop.eup %2310  ;;  %v1748_v41 = vadd.f32 1.0, %v2309_v37  ;;  %2322 = vpow2.f32 %v1692_v35  ;;  %v1556_v42 = vadd.f32 %v2782_v2, %v1555_v39  ;;  %v2237_v24 = vpop.f32.mrb[38].mxu1 }
 0x397   : > { %v2313_v43 = vpop.eup %2312  ;;  %v1746_v44 = vadd.f32 1.0, %v2311_v40  ;;  %v1660_v45 = vsub.f32 0.0, %v1564_v38  ;;  %v1567_v46 = vadd.f32 %v2237_v24, %v2782_v2  ;;  %v1558_v26 = vpop.f32.mrb[39].mxu1 }
 0x398   : > { %v2315_v48 = vpop.eup %2314  ;;  %2324 = vrcp.f32 %v1748_v41  ;;  %v1749_v49 = vadd.f32 1.0, %v2313_v43  ;;  %v1658_v25 = vsub.f32 0.0, %v1556_v42  ;;  %v1559_v50 = vadd.f32 %v2782_v2, %v1558_v26 }
 0x399   : > { %2326 = vrcp.f32 %v1746_v44  ;;  %v1747_v51 = vadd.f32 1.0, %v2315_v48  ;;  %v1702_v52 = vmul.f32 1.442695, %v1660_v45  ;;  %v1661_v53 = vsub.f32 0.0, %v1567_v46 }
 0x39a   : > { %2328 = vrcp.f32 %v1749_v49  ;;  %v1698_v54 = vmul.f32 1.442695, %v1658_v25  ;;  %v1659_v55 = vsub.f32 0.0, %v1559_v50 }
 0x39b   : > { %2330 = vrcp.f32 %v1747_v51  ;;  %v1704_v56 = vmul.f32 1.442695, %v1661_v53 }
 0x39c   : > { %2332 = vpow2.f32 %v1702_v52  ;;  %v1700_v57 = vmul.f32 1.442695, %v1659_v55  ;;  %v2240_v58 = vpop.f32.mrb[40].mxu1 }
 0x39d   : > { %v2317_v59 = vpop.eup %2316  ;;  %2334 = vpow2.f32 %v1698_v54  ;;  %v1580_v60 = vadd.f32 %v2240_v58, %v2782_v2  ;;  %v1571_v61 = vpop.f32.mrb[41].mxu1 }
 0x39e   : > { %v2319_v62 = vpop.eup %2318  ;;  %v1752_v63 = vadd.f32 1.0, %v2317_v59  ;;  %2336 = vpow2.f32 %v1704_v56  ;;  %v1572_v0 = vadd.f32 %v2782_v2, %v1571_v61  ;;  %v2241_v47 = vpop.f32.mrb[42].mxu1 }
 0x39f   : > { %v2321_v3 = vpop.eup %2320  ;;  %v1750_v4 = vadd.f32 1.0, %v2319_v62  ;;  %2338 = vpow2.f32 %v1700_v57  ;;  %v1664_v5 = vsub.f32 0.0, %v1580_v60  ;;  %v1583_v6 = vadd.f32 %v2241_v47, %v2782_v2  ;;  %v1574_v7 = vpop.f32.mrb[43].mxu1 }
 0x3a0   : > { %v2323_v8 = vpop.eup %2322  ;;  %2340 = vrcp.f32 %v1752_v63  ;;  %v1753_v9 = vadd.f32 1.0, %v2321_v3  ;;  %v1662_v10 = vsub.f32 0.0, %v1572_v0  ;;  %v1575_v11 = vadd.f32 %v2782_v2, %v1574_v7 }
 0x3a1   : > { %2342 = vrcp.f32 %v1750_v4  ;;  %v1751_v12 = vadd.f32 1.0, %v2323_v8  ;;  %v1710_v13 = vmul.f32 1.442695, %v1664_v5  ;;  %v1665_v14 = vsub.f32 0.0, %v1583_v6 }
 0x3a2   : > { %v2325_v15 = vpop.eup %2324  ;;  %2344 = vrcp.f32 %v1753_v9  ;;  %v1706_v16 = vmul.f32 1.442695, %v1662_v10  ;;  %v1663_v17 = vsub.f32 0.0, %v1575_v11 }
 0x3a3   : > { %v2327_v18 = vpop.eup %2326  ;;  %1845 = vst.msk [vmem:[%s2804_s24 + $0x10] sm:$0xff] %vm1842_vm1, %v2325_v15  ;;  %2346 = vrcp.f32 %v1751_v12  ;;  %v1712_v19 = vmul.f32 1.442695, %v1665_v14 }
 0x3a4   : > { %v2329_v20 = vpop.eup %2328  ;;  %1843 = vst.msk [vmem:[%s2804_s24] sm:$0xff] %vm1842_vm1, %v2327_v18  ;;  %2348 = vpow2.f32 %v1710_v13  ;;  %v1708_v1 = vmul.f32 1.442695, %v1663_v17  ;;  %v2244_v21 = vpop.f32.mrb[44].mxu1 }
 0x3a5   : > { %v2331_v22 = vpop.eup %2330  ;;  %1846 = vst.msk [vmem:[%s2804_s24 + $0x18] sm:$0xff] %vm1842_vm1, %v2329_v20  ;;  %2350 = vpow2.f32 %v1706_v16  ;;  %v1596_v27 = vadd.f32 %v2244_v21, %v2782_v2  ;;  %v1587_v28 = vpop.f32.mrb[45].mxu1 }
 0x3a6   : > { %v2333_v29 = vpop.eup %2332  ;;  %1844 = vst.msk [vmem:[%s2804_s24 + $0x8] sm:$0xff] %vm1842_vm1, %v2331_v22  ;;  %2352 = vpow2.f32 %v1712_v19  ;;  %v1588_v30 = vadd.f32 %v2782_v2, %v1587_v28  ;;  %v2245_v31 = vpop.f32.mrb[46].mxu1 }
 0x3a7   : > { %v2335_v23 = vpop.eup %2334  ;;  %v1756_v32 = vadd.f32 1.0, %v2333_v29  ;;  %2354 = vpow2.f32 %v1708_v1  ;;  %v1668_v33 = vsub.f32 0.0, %v1596_v27  ;;  %v1599_v34 = vadd.f32 %v2245_v31, %v2782_v2  ;;  %v1590_v35 = vpop.f32.mrb[47].mxu1 }
 0x3a8   : > { %v2337_v36 = vpop.eup %2336  ;;  %v1754_v37 = vadd.f32 1.0, %v2335_v23  ;;  %v1666_v38 = vsub.f32 0.0, %v1588_v30  ;;  %v1591_v39 = vadd.f32 %v2782_v2, %v1590_v35 }
 0x3a9   : > { %v2339_v40 = vpop.eup %2338  ;;  %2356 = vrcp.f32 %v1756_v32  ;;  %v1757_v41 = vadd.f32 1.0, %v2337_v36  ;;  %v1718_v42 = vmul.f32 1.442695, %v1668_v33  ;;  %v1669_v24 = vsub.f32 0.0, %v1599_v34 }
 0x3aa   : > { %v2341_v43 = vpop.eup %2340  ;;  %2358 = vrcp.f32 %v1754_v37  ;;  %v1755_v44 = vadd.f32 1.0, %v2339_v40  ;;  %v1714_v45 = vmul.f32 1.442695, %v1666_v38  ;;  %v1667_v46 = vsub.f32 0.0, %v1591_v39 }
 0x3ab   : > { %v2343_v26 = vpop.eup %2342  ;;  %1849 = vst.msk [vmem:[%s2804_s24 + $0x30] sm:$0xff] %vm1842_vm1, %v2341_v43  ;;  %2360 = vrcp.f32 %v1757_v41  ;;  %v1720_v48 = vmul.f32 1.442695, %v1669_v24 }
 0x3ac   : > { %v2345_v49 = vpop.eup %2344  ;;  %1847 = vst.msk [vmem:[%s2804_s24 + $0x20] sm:$0xff] %vm1842_vm1, %v2343_v26  ;;  %2362 = vrcp.f32 %v1755_v44  ;;  %v1716_v25 = vmul.f32 1.442695, %v1667_v46  ;;  %v2248_v50 = vpop.f32.mrb[48].mxu1 }
 0x3ad   : > { %v2347_v51 = vpop.eup %2346  ;;  %1850 = vst.msk [vmem:[%s2804_s24 + $0x38] sm:$0xff] %vm1842_vm1, %v2345_v49  ;;  %2364 = vpow2.f32 %v1718_v42  ;;  %v1612_v52 = vadd.f32 %v2248_v50, %v2782_v2  ;;  %v1603_v53 = vpop.f32.mrb[49].mxu1 }
 0x3ae   : > { %v2349_v54 = vpop.eup %2348  ;;  %1848 = vst.msk [vmem:[%s2804_s24 + $0x28] sm:$0xff] %vm1842_vm1, %v2347_v51  ;;  %2366 = vpow2.f32 %v1714_v45  ;;  %v1604_v55 = vadd.f32 %v2782_v2, %v1603_v53  ;;  %v2249_v56 = vpop.f32.mrb[50].mxu1 }
 0x3af   : > { %v2351_v57 = vpop.eup %2350  ;;  %v1760_v58 = vadd.f32 1.0, %v2349_v54  ;;  %2368 = vpow2.f32 %v1720_v48  ;;  %v1672_v59 = vsub.f32 0.0, %v1612_v52  ;;  %v1615_v60 = vadd.f32 %v2249_v56, %v2782_v2  ;;  %v1606_v61 = vpop.f32.mrb[51].mxu1 }
 0x3b0   : > { %v2353_v62 = vpop.eup %2352  ;;  %v1758_v63 = vadd.f32 1.0, %v2351_v57  ;;  %2370 = vpow2.f32 %v1716_v25  ;;  %v1670_v0 = vsub.f32 0.0, %v1604_v55  ;;  %v1607_v47 = vadd.f32 %v2782_v2, %v1606_v61 }
 0x3b1   : > { %v2355_v3 = vpop.eup %2354  ;;  %2372 = vrcp.f32 %v1760_v58  ;;  %v1761_v4 = vadd.f32 1.0, %v2353_v62  ;;  %v1726_v5 = vmul.f32 1.442695, %v1672_v59  ;;  %v1673_v6 = vsub.f32 0.0, %v1615_v60 }
 0x3b2   : > { %2374 = vrcp.f32 %v1758_v63  ;;  %v1759_v7 = vadd.f32 1.0, %v2355_v3  ;;  %v1722_v8 = vmul.f32 1.442695, %v1670_v0  ;;  %v1671_v9 = vsub.f32 0.0, %v1607_v47 }
 0x3b3   : > { %v2357_v10 = vpop.eup %2356  ;;  %2376 = vrcp.f32 %v1761_v4  ;;  %v1728_v11 = vmul.f32 1.442695, %v1673_v6 }
 0x3b4   : > { %v2359_v12 = vpop.eup %2358  ;;  %1853 = vst.msk [vmem:[%s2804_s24 + $0x50] sm:$0xff] %vm1842_vm1, %v2357_v10  ;;  %2378 = vrcp.f32 %v1759_v7  ;;  %v1724_v13 = vmul.f32 1.442695, %v1671_v9  ;;  %v2252_v14 = vpop.f32.mrb[52].mxu1 }
 0x3b5   : > { %v2361_v15 = vpop.eup %2360  ;;  %1851 = vst.msk [vmem:[%s2804_s24 + $0x40] sm:$0xff] %vm1842_vm1, %v2359_v12  ;;  %2380 = vpow2.f32 %v1726_v5  ;;  %v1628_v16 = vadd.f32 %v2252_v14, %v2782_v2  ;;  %v1619_v17 = vpop.f32.mrb[53].mxu1 }
 0x3b6   : > { %v2363_v18 = vpop.eup %2362  ;;  %1854 = vst.msk [vmem:[%s2804_s24 + $0x58] sm:$0xff] %vm1842_vm1, %v2361_v15  ;;  %2382 = vpow2.f32 %v1722_v8  ;;  %v1620_v19 = vadd.f32 %v2782_v2, %v1619_v17  ;;  %v2253_v20 = vpop.f32.mrb[54].mxu1 }
 0x3b7   : > { %v2365_v1 = vpop.eup %2364  ;;  %1852 = vst.msk [vmem:[%s2804_s24 + $0x48] sm:$0xff] %vm1842_vm1, %v2363_v18  ;;  %2384 = vpow2.f32 %v1728_v11  ;;  %v1676_v21 = vsub.f32 0.0, %v1628_v16  ;;  %v1631_v22 = vadd.f32 %v2253_v20, %v2782_v2  ;;  %v1622_v27 = vpop.f32.mrb[55].mxu1 }
 0x3b8   : > { %v2367_v28 = vpop.eup %2366  ;;  %v1764_v29 = vadd.f32 1.0, %v2365_v1  ;;  %2386 = vpow2.f32 %v1724_v13  ;;  %v1674_v30 = vsub.f32 0.0, %v1620_v19  ;;  %v1623_v31 = vadd.f32 %v2782_v2, %v1622_v27 }
 0x3b9   : > { %v2369_v23 = vpop.eup %2368  ;;  %v1762_v32 = vadd.f32 1.0, %v2367_v28  ;;  %v1677_v33 = vsub.f32 0.0, %v1631_v22  ;;  %v1734_v36 = vmul.f32 1.442695, %v1676_v21 }
 0x3ba   : > { %v2371_v34 = vpop.eup %2370  ;;  %2388 = vrcp.f32 %v1764_v29  ;;  %v1765_v35 = vadd.f32 1.0, %v2369_v23  ;;  %v1675_v37 = vsub.f32 0.0, %v1623_v31  ;;  %v1730_v40 = vmul.f32 1.442695, %v1674_v30 }
 0x3bb   : > { %v2373_v38 = vpop.eup %2372  ;;  %2390 = vrcp.f32 %v1762_v32  ;;  %v1763_v39 = vadd.f32 1.0, %v2371_v34  ;;  %v1736_v42 = vmul.f32 1.442695, %v1677_v33 }
 0x3bc   : > { %v2375_v41 = vpop.eup %2374  ;;  %1857 = vst.msk [vmem:[%s2804_s24 + $0x70] sm:$0xff] %vm1842_vm1, %v2373_v38  ;;  %2392 = vrcp.f32 %v1765_v35  ;;  %v2256_v24 = vpop.f32.mrb[56].mxu1  ;;  %v1732_v44 = vmul.f32 1.442695, %v1675_v37 }
 0x3bd   : > { %v2377_v43 = vpop.eup %2376  ;;  %1855 = vst.msk [vmem:[%s2804_s24 + $0x60] sm:$0xff] %vm1842_vm1, %v2375_v41  ;;  %2394 = vrcp.f32 %v1763_v39  ;;  %v1644_v45 = vadd.f32 %v2256_v24, %v2782_v2  ;;  %v1635_v46 = vpop.f32.mrb[57].mxu1 }
 0x3be   : > { %v2379_v26 = vpop.eup %2378  ;;  %1858 = vst.msk [vmem:[%s2804_s24 + $0x78] sm:$0xff] %vm1842_vm1, %v2377_v43  ;;  %2396 = vpow2.f32 %v1734_v36  ;;  %v1636_v48 = vadd.f32 %v2782_v2, %v1635_v46  ;;  %v2257_v49 = vpop.f32.mrb[58].mxu1 }
 0x3bf   : > { %v2381_v25 = vpop.eup %2380  ;;  %1856 = vst.msk [vmem:[%s2804_s24 + $0x68] sm:$0xff] %vm1842_vm1, %v2379_v26  ;;  %2398 = vpow2.f32 %v1730_v40  ;;  %v1680_v50 = vsub.f32 0.0, %v1644_v45  ;;  %v1647_v51 = vadd.f32 %v2257_v49, %v2782_v2  ;;  %v1638_v52 = vpop.f32.mrb[59].mxu1 }
 0x3c0   : > { %v2383_v53 = vpop.eup %2382  ;;  %v1768_v54 = vadd.f32 1.0, %v2381_v25  ;;  %2400 = vpow2.f32 %v1736_v42  ;;  %v1678_v55 = vsub.f32 0.0, %v1636_v48  ;;  %v1639_v56 = vadd.f32 %v2782_v2, %v1638_v52 }
 0x3c1   : > { %v2385_v57 = vpop.eup %2384  ;;  %v1766_v58 = vadd.f32 1.0, %v2383_v53  ;;  %2402 = vpow2.f32 %v1732_v44  ;;  %v1681_v59 = vsub.f32 0.0, %v1647_v51  ;;  %v1742_v62 = vmul.f32 1.442695, %v1680_v50 }
 0x3c2   : > { %v2387_v60 = vpop.eup %2386  ;;  %2404 = vrcp.f32 %v1768_v54  ;;  %v1769_v61 = vadd.f32 1.0, %v2385_v57  ;;  %v1679_v63 = vsub.f32 0.0, %v1639_v56  ;;  %v1738_v47 = vmul.f32 1.442695, %v1678_v55 }
 0x3c3   : > { %2406 = vrcp.f32 %v1766_v58  ;;  %v1767_v0 = vadd.f32 1.0, %v2387_v60  ;;  %v1744_v4 = vmul.f32 1.442695, %v1681_v59 }
 0x3c4   : > { %v2389_v3 = vpop.eup %2388  ;;  %2408 = vrcp.f32 %v1769_v61  ;;  %v1740_v5 = vmul.f32 1.442695, %v1679_v63 }
 0x3c5   : > { %v2391_v2 = vpop.eup %2390  ;;  %1861 = vst.msk [vmem:[%s2804_s24 + $0x90] sm:$0xff] %vm1842_vm1, %v2389_v3  ;;  %2410 = vrcp.f32 %v1767_v0 }
 0x3c6   : > { %v2393_v6 = vpop.eup %2392  ;;  %1859 = vst.msk [vmem:[%s2804_s24 + $0x80] sm:$0xff] %vm1842_vm1, %v2391_v2  ;;  %2412 = vpow2.f32 %v1742_v62 }
 0x3c7   : > { %v2395_v7 = vpop.eup %2394  ;;  %1862 = vst.msk [vmem:[%s2804_s24 + $0x98] sm:$0xff] %vm1842_vm1, %v2393_v6  ;;  %2414 = vpow2.f32 %v1738_v47 }
 0x3c8   : > { %v2397_v8 = vpop.eup %2396  ;;  %1860 = vst.msk [vmem:[%s2804_s24 + $0x88] sm:$0xff] %vm1842_vm1, %v2395_v7  ;;  %2416 = vpow2.f32 %v1744_v4 }
 0x3c9   : > { %v2399_v9 = vpop.eup %2398  ;;  %v1772_v10 = vadd.f32 1.0, %v2397_v8  ;;  %2418 = vpow2.f32 %v1740_v5 }
 0x3ca   : > { %v2401_v11 = vpop.eup %2400  ;;  %v1770_v12 = vadd.f32 1.0, %v2399_v9 }
 0x3cb   : > { %v2403_v13 = vpop.eup %2402  ;;  %2420 = vrcp.f32 %v1772_v10  ;;  %v1773_v14 = vadd.f32 1.0, %v2401_v11 }
 0x3cc   : > { %v2405_v15 = vpop.eup %2404  ;;  %2422 = vrcp.f32 %v1770_v12  ;;  %v1771_v16 = vadd.f32 1.0, %v2403_v13 }
 0x3cd   : > { %v2407_v17 = vpop.eup %2406  ;;  %1865 = vst.msk [vmem:[%s2804_s24 + $0xb0] sm:$0xff] %vm1842_vm1, %v2405_v15  ;;  %2424 = vrcp.f32 %v1773_v14 }
 0x3ce   : > { %v2409_v18 = vpop.eup %2408  ;;  %1863 = vst.msk [vmem:[%s2804_s24 + $0xa0] sm:$0xff] %vm1842_vm1, %v2407_v17  ;;  %2426 = vrcp.f32 %v1771_v16 }
 0x3cf   : > { %v2411_v19 = vpop.eup %2410  ;;  %1866 = vst.msk [vmem:[%s2804_s24 + $0xb8] sm:$0xff] %vm1842_vm1, %v2409_v18 }
 0x3d0   : > { %v2413_v20 = vpop.eup %2412  ;;  %1864 = vst.msk [vmem:[%s2804_s24 + $0xa8] sm:$0xff] %vm1842_vm1, %v2411_v19 }
 0x3d1   : > { %v2415_v1 = vpop.eup %2414  ;;  %v1776_v21 = vadd.f32 1.0, %v2413_v20 }
 0x3d2   : > { %v2417_v22 = vpop.eup %2416  ;;  %v1774_v27 = vadd.f32 1.0, %v2415_v1 }
 0x3d3   : > { %v2419_v28 = vpop.eup %2418  ;;  %2428 = vrcp.f32 %v1776_v21  ;;  %v1777_v29 = vadd.f32 1.0, %v2417_v22 }
 0x3d4   : > { %2430 = vrcp.f32 %v1774_v27  ;;  %v1775_v30 = vadd.f32 1.0, %v2419_v28 }
 0x3d5   : > { %v2421_v31 = vpop.eup %2420  ;;  %2432 = vrcp.f32 %v1777_v29 }
 0x3d6   : > { %v2423_v23 = vpop.eup %2422  ;;  %1869 = vst.msk [vmem:[%s2804_s24 + $0xd0] sm:$0xff] %vm1842_vm1, %v2421_v31  ;;  %2434 = vrcp.f32 %v1775_v30 }
 0x3d7   : > { %v2425_v32 = vpop.eup %2424  ;;  %1867 = vst.msk [vmem:[%s2804_s24 + $0xc0] sm:$0xff] %vm1842_vm1, %v2423_v23 }
 0x3d8   : > { %v2427_v33 = vpop.eup %2426  ;;  %1870 = vst.msk [vmem:[%s2804_s24 + $0xd8] sm:$0xff] %vm1842_vm1, %v2425_v32 }
 0x3d9   : > { %1868 = vst.msk [vmem:[%s2804_s24 + $0xc8] sm:$0xff] %vm1842_vm1, %v2427_v33 }
 0x3dd   : > { %v2429_v34 = vpop.eup %2428 }
 0x3de   : > { %v2431_v35 = vpop.eup %2430  ;;  %1873 = vst.msk [vmem:[%s2804_s24 + $0xf0] sm:$0xff] %vm1842_vm1, %v2429_v34 }
 0x3df   : > { %v2433_v36 = vpop.eup %2432  ;;  %1871 = vst.msk [vmem:[%s2804_s24 + $0xe0] sm:$0xff] %vm1842_vm1, %v2431_v35 }
 0x3e0   : > { %v2435_v37 = vpop.eup %2434  ;;  %1874 = vst.msk [vmem:[%s2804_s24 + $0xf8] sm:$0xff] %vm1842_vm1, %v2433_v36 }
 0x3e1   : > { %1872 = vst.msk [vmem:[%s2804_s24 + $0xe8] sm:$0xff] %vm1842_vm1, %v2435_v37 }
 0x3e2 PF: > { %s19_s30 = sadd.s32 1, %s2442_s30  }
 0x3e3   : > { %p16_p4 = scmp.ge.s32.totalorder %s19_s30, 4  }
 0x3e5   :  { %18 = sbr.rel (!%p16_p4) target bundleno = 1 (0x1), region = 86 }

</bundles_post_ra>
